<compile_context>
chip_gen: v5e
topology: v5e:2x2
jax: 0.10.0
libtpu: 0.0.40
codegen_flags: <defaults>
</compile_context>

<pallas_src>
import functools
import math

import jax
import jax.numpy as jnp
from jax.experimental import pallas as pl
from jax.experimental.pallas import tpu as pltpu


# ----------------------------------------------------------------------------
# Kernel 1: fused QKV projection + SE(3) pose transforms of q, k, v.
# ----------------------------------------------------------------------------
def _proj_pose_kernel(x_ref, minv_ref, mkv_ref, wqkv_ref, bqkv_ref,
                      q_ref, k_ref, v_ref, *, heads, dim_head):
    C = dim_head // 4          # number of 4-vectors per head
    HC = heads * C             # lanes per pose component (all heads)
    inner = heads * dim_head

    minv = minv_ref[0].astype(jnp.float32)   # [tn, 16] row-major 4x4 (q inverse pose)
    mkv = mkv_ref[0].astype(jnp.float32)     # [tn, 16] row-major 4x4 (kv pose)

    # Fused QKV projection: MXU matmul in the compute dtype, f32 accumulation.
    # (The softmax scale is pre-folded into the q columns of wqkv/bqkv.)
    qkv = jnp.dot(x_ref[0], wqkv_ref[...], preferred_element_type=jnp.float32)
    qkv = qkv + bqkv_ref[...].astype(jnp.float32)        # [tn, 3*inner] f32

    # Column layout of qkv (produced by the host-side weight permutation):
    #   q chunk : col  j*HC + h*C + c                 <-> orig q feature (h, c*4 + j)
    #   kv chunk: col  inner + j*2HC + s*HC + h*C + c  (s=0 -> k, s=1 -> v)
    # Each pose component j is one contiguous full-width lane block; k and v
    # share a block so they reuse the same per-token matrix-entry broadcast.
    q_blk = [qkv[:, j * HC:(j + 1) * HC] for j in range(4)]
    kv_blk = [qkv[:, inner + j * 2 * HC: inner + (j + 1) * 2 * HC] for j in range(4)]

    # q (query map, M^T): out_i = sum_j minv[j, i] * q_j.
    # Last row of minv is (0,0,0,1): skip the j=3 term for i<3 (exact zeros).
    q_out = []
    for i in range(3):
        acc = minv[:, i:i + 1] * q_blk[0]
        for j in range(1, 3):
            acc = acc + minv[:, j * 4 + i:j * 4 + i + 1] * q_blk[j]
        q_out.append(acc)
    acc = q_blk[3]                                        # minv[3,3] == 1
    for j in range(3):
        acc = acc + minv[:, j * 4 + 3:j * 4 + 4] * q_blk[j]
    q_out.append(acc)

    # k and v together: out_i = sum_j mkv[i, j] * kv_j.
    # Last row of mkv is (0,0,0,1): kv_out[3] is a plain copy (exact).
    kv_out = []
    for i in range(3):
        acc = mkv[:, i * 4:i * 4 + 1] * kv_blk[0]
        for j in range(1, 4):
            acc = acc + mkv[:, i * 4 + j:i * 4 + j + 1] * kv_blk[j]
        kv_out.append(acc)
    kv_out.append(kv_blk[3])

    # Re-gather (once per token) to per-head contiguous layout P:
    #   col h*dim_head + i*C + c  <->  posed feature (head h, 4-vector c, comp i)
    # TODO(synk): replace these narrow-lane concatenates with one fused
    # reshape/transpose (pltpu.einshape) once verified to lower without relayout.
    odt = q_ref.dtype
    q_ref[0] = jnp.concatenate(
        [q_out[i][:, h * C:(h + 1) * C] for h in range(heads) for i in range(4)],
        axis=-1).astype(odt)
    k_ref[0] = jnp.concatenate(
        [kv_out[i][:, h * C:(h + 1) * C] for h in range(heads) for i in range(4)],
        axis=-1).astype(odt)
    v_ref[0] = jnp.concatenate(
        [kv_out[i][:, HC + h * C:HC + (h + 1) * C] for h in range(heads) for i in range(4)],
        axis=-1).astype(odt)


# ----------------------------------------------------------------------------
# Kernel 2: KV-tiled online-softmax attention (+ output pose transform and
# output projection on the last KV step).
# Grid: (batch, query-tile, kv-tile) with the kv axis marked "arbitrary".
# ----------------------------------------------------------------------------
def _attn_kernel(minv_ref, q_ref, k_ref, v_ref, wout_ref, bout_ref, o_ref,
                 m_sc, l_sc, acc_sc, *, heads, dim_head, approx_recip):
    C = dim_head // 4
    HC = heads * C
    cdt = q_ref.dtype                            # compute dtype (bf16 or f32)
    ki = pl.program_id(2)

    @pl.when(ki == 0)
    def _():
        m_sc[...] = jnp.full(m_sc.shape, -jnp.inf, m_sc.dtype)
        l_sc[...] = jnp.zeros(l_sc.shape, l_sc.dtype)
        acc_sc[...] = jnp.zeros(acc_sc.shape, acc_sc.dtype)

    q_t = q_ref[0]                               # [tq,  inner]  layout P (scale folded in)
    k_t = k_ref[0]                               # [tkv, inner]  layout P
    v_t = v_ref[0]                               # [tkv, inner]  layout P

    # Online softmax over the KV grid axis, per head.
    for h in range(heads):
        sl = slice(h * dim_head, (h + 1) * dim_head)
        qh = q_t[:, sl]
        kh = k_t[:, sl]
        vh = v_t[:, sl]

        s = jax.lax.dot_general(qh, kh, (((1,), (1,)), ((), ())),
                                preferred_element_type=jnp.float32)   # [tq, tkv]
        m_prev = m_sc[h]                                              # [tq, 1]
        m_new = jnp.maximum(m_prev, jnp.max(s, axis=-1, keepdims=True))
        alpha = jnp.exp(m_prev - m_new)
        p = jnp.exp(s - m_new)
        l_sc[h] = alpha * l_sc[h] + jnp.sum(p, axis=-1, keepdims=True)
        acc_sc[h] = alpha * acc_sc[h] + jnp.dot(p.astype(cdt), vh,
                                                preferred_element_type=jnp.float32)
        m_sc[h] = m_new

    # Epilogue on the last KV step: normalize, output pose transform (once, at
    # full lane width), output projection.
    @pl.when(ki == pl.num_programs(2) - 1)
    def _():
        minv = minv_ref[0].astype(jnp.float32)   # [tq, 16] (query inverse poses)
        ohs = []
        for h in range(heads):
            r = pl.reciprocal(l_sc[h], approx=approx_recip)           # [tq, 1]
            ohs.append(acc_sc[h] * r)                                  # [tq, dim_head] f32

        # All heads, component-major (layout L): col j*HC + h*C + c.
        acc = jnp.concatenate(
            [ohs[h][:, j * C:(j + 1) * C] for j in range(4) for h in range(heads)],
            axis=-1)                                                   # [tq, inner]

        # Output pose transform (minv, non-transposed): out_i = sum_j minv[i,j]*acc_j.
        # Last row of minv is (0,0,0,1): outs[3] is a plain copy (exact).
        outs = []
        for i in range(3):
            a = minv[:, i * 4:i * 4 + 1] * acc[:, :HC]
            for j in range(1, 4):
                a = a + minv[:, i * 4 + j:i * 4 + j + 1] * acc[:, j * HC:(j + 1) * HC]
            outs.append(a)
        outs.append(acc[:, 3 * HC:4 * HC])
        out_L = jnp.concatenate(outs, axis=-1).astype(cdt)   # [tq, inner] layout L

        # Full-inner output projection (W_out rows pre-permuted to layout L).
        res = jnp.dot(out_L, wout_ref[...], preferred_element_type=jnp.float32)
        res = res + bout_ref[...].astype(jnp.float32)
        o_ref[0] = res.astype(o_ref.dtype)


# ----------------------------------------------------------------------------
# Glue: pose construction, weight permutations, tile/VMEM sizing, pallas_calls.
# ----------------------------------------------------------------------------
def _se3(rotations, translations):
    B, N = rotations.shape[:2]
    M = jnp.zeros((B, N, 4, 4), jnp.float32)
    M = M.at[..., :3, :3].set(rotations)
    M = M.at[..., :3, 3].set(translations)
    M = M.at[..., 3, 3].set(1.0)
    return M


def _invert_se3(rotations, translations):
    R_inv = jnp.swapaxes(rotations, -1, -2)
    t_inv = -jnp.einsum('bnij,bnj->bni', R_inv, translations)
    return _se3(R_inv, t_inv)


def _pick_tile(n, target, multiple=16):
    """Largest divisor of n that is <= target, preferring multiples of
    `multiple` (bf16 sublane pack), then multiples of 8; otherwise n itself."""
    if n <= target:
        return n
    for m in (multiple, 8):
        for t in range(target - target % m, m - 1, -m):
            if n % t == 0:
                return t
    return n


def _vmem_limit(block_bytes, lo=32 << 20, hi=112 << 20):
    # Scoped-VMEM request derived from the actual block sizes (x2 for in-kernel
    # f32 intermediates / relayouts, +8 MiB compiler headroom) instead of a
    # blanket 64 MiB (which is the entire per-core VMEM on v7x).
    return int(max(lo, min(hi, 2 * block_bytes + (8 << 20))))


def invariant_pose_attention(x, rotations, translations, params, *, heads,
                             dim_head, compute_dtype=jnp.bfloat16,
                             tile_n=512, tile_q=256, tile_kv=512):
    """Forward pass of InvariantPoseAttention (self-attention, v_transform=True).

    Tile targets: tile_q=256 suits v6e/v7x; on v5e (128-wide MXU, lower HBM BW)
    tile_q=128 with a larger tile_kv is usually the better trade.
    """
    B, N, dim = x.shape
    assert dim_head % 4 == 0, "dim_head must be divisible by 4 (SE(3) 4-vectors)"
    inner = heads * dim_head
    C = dim_head // 4
    scale = dim_head ** (-0.5)

    # Per-token 4x4 pose matrices, flattened row-major (tiny host-side glue).
    minv_flat = _invert_se3(rotations, translations).reshape(B, N, 16)
    mkv_flat = _se3(rotations, translations).reshape(B, N, 16)

    # layout L (component-major across heads): new col j*HC + h*C + c
    #   <- original col h*dim_head + c*4 + j
    permL = jnp.array(
        [h * dim_head + c * 4 + j
         for j in range(4) for h in range(heads) for c in range(C)],
        dtype=jnp.int32)
    # interleaved k/v layout: new col j*2HC + s*HC + h*C + c
    #   <- original col s*inner + h*dim_head + c*4 + j   (s=0 -> k, s=1 -> v)
    permKV = jnp.array(
        [s * inner + h * dim_head + c * 4 + j
         for j in range(4) for s in range(2)
         for h in range(heads) for c in range(C)],
        dtype=jnp.int32)
    col_perm = jnp.concatenate([permL, inner + permKV])

    # Fold the softmax scale into the q projection (q is linear through both the
    # projection and the pose transform), removing the per-head sim scaling.
    col_scale = jnp.concatenate([jnp.full((inner,), scale, jnp.float32),
                                 jnp.ones((2 * inner,), jnp.float32)])
    wqkv_s = params['wqkv'] * col_scale[None, :]
    bqkv_s = params['bqkv'] * col_scale

    wqkv_p = wqkv_s[:, col_perm].astype(compute_dtype)            # [dim, 3*inner]
    bqkv_p = bqkv_s[col_perm][None, :].astype(jnp.float32)
    wout_p = params['wout'][permL, :].astype(compute_dtype)       # [inner, dim]
    bout_p = params['bout'][None, :].astype(jnp.float32)
    x_c = x.astype(compute_dtype)

    tn = _pick_tile(N, tile_n)     # token tile (projection/pose kernel)
    tq = _pick_tile(N, tile_q)     # query tile (attention kernel)
    tkv = _pick_tile(N, tile_kv)   # key/value tile (attention kernel)

    csz = jnp.dtype(compute_dtype).itemsize
    osz = jnp.dtype(x.dtype).itemsize
    approx = bool(jnp.dtype(compute_dtype) != jnp.dtype(jnp.float32))

    # VMEM footprints from the actual block sizes.
    k1_bytes = (tn * dim * csz * 2 + 2 * (tn * 16 * 4 * 2)
                + dim * 3 * inner * csz + 3 * inner * 4
                + 3 * (tn * inner * csz * 2)
                + tn * 3 * inner * 4)                     # f32 qkv intermediate
    k2_bytes = (tq * 16 * 4 * 2 + tq * inner * csz * 2
                + 2 * (tkv * inner * csz * 2)
                + inner * dim * csz + dim * 4
                + tq * dim * osz * 2
                + heads * tq * (dim_head + 2) * 4         # flash accumulators
                + heads * tq * tkv * 4)                   # f32 sim intermediates

    k1 = functools.partial(_proj_pose_kernel, heads=heads, dim_head=dim_head)
    k2 = functools.partial(_attn_kernel, heads=heads, dim_head=dim_head,
                           approx_recip=approx)
    posed_shape = jax.ShapeDtypeStruct((B, N, inner), compute_dtype)

    def _run(single_buffer_consts):
        def _const_spec(block_shape, index_map):
            # Grid-invariant input: single-buffer it (it is DMA'd once, so a
            # second pipeline buffer only wastes VMEM).
            if single_buffer_consts:
                return pl.BlockSpec(block_shape, index_map,
                                    pipeline_mode=pl.Buffered(1))
            return pl.BlockSpec(block_shape, index_map)

        # ---- kernel 1: QKV projection + q/k/v pose transforms ---------------
        q_posed, k_posed, v_posed = pl.pallas_call(
            k1,
            out_shape=(posed_shape, posed_shape, posed_shape),
            grid_spec=pltpu.PrefetchScalarGridSpec(
                num_scalar_prefetch=0,
                grid=(B, N // tn),
                in_specs=[
                    pl.BlockSpec((1, tn, dim), lambda b, t: (b, t, 0)),
                    pl.BlockSpec((1, tn, 16), lambda b, t: (b, t, 0)),
                    pl.BlockSpec((1, tn, 16), lambda b, t: (b, t, 0)),
                    _const_spec((dim, 3 * inner), lambda b, t: (0, 0)),
                    _const_spec((1, 3 * inner), lambda b, t: (0, 0)),
                ],
                out_specs=[
                    pl.BlockSpec((1, tn, inner), lambda b, t: (b, t, 0)),
                    pl.BlockSpec((1, tn, inner), lambda b, t: (b, t, 0)),
                    pl.BlockSpec((1, tn, inner), lambda b, t: (b, t, 0)),
                ],
            ),
            compiler_params=pltpu.CompilerParams(
                dimension_semantics=("parallel", "parallel"),
                vmem_limit_bytes=_vmem_limit(k1_bytes)),
        )(x_c, minv_flat, mkv_flat, wqkv_p, bqkv_p)

        # ---- kernel 2: KV-tiled flash attention + output transform/projection
        out = pl.pallas_call(
            k2,
            out_shape=jax.ShapeDtypeStruct((B, N, dim), x.dtype),
            grid_spec=pltpu.PrefetchScalarGridSpec(
                num_scalar_prefetch=0,
                grid=(B, N // tq, N // tkv),
                in_specs=[
                    pl.BlockSpec((1, tq, 16), lambda b, qi, ki: (b, qi, 0)),
                    pl.BlockSpec((1, tq, inner), lambda b, qi, ki: (b, qi, 0)),
                    pl.BlockSpec((1, tkv, inner), lambda b, qi, ki: (b, ki, 0)),
                    pl.BlockSpec((1, tkv, inner), lambda b, qi, ki: (b, ki, 0)),
                    _const_spec((inner, dim), lambda b, qi, ki: (0, 0)),
                    _const_spec((1, dim), lambda b, qi, ki: (0, 0)),
                ],
                out_specs=pl.BlockSpec((1, tq, dim), lambda b, qi, ki: (b, qi, 0)),
                scratch_shapes=[
                    pltpu.VMEM((heads, tq, 1), jnp.float32),         # running max
                    pltpu.VMEM((heads, tq, 1), jnp.float32),         # running denom
                    pltpu.VMEM((heads, tq, dim_head), jnp.float32),  # running numerator
                ],
            ),
            compiler_params=pltpu.CompilerParams(
                dimension_semantics=("parallel", "parallel", "arbitrary"),
                vmem_limit_bytes=_vmem_limit(k2_bytes)),
        )(minv_flat, q_posed, k_posed, v_posed, wout_p, bout_p)
        return out

    try:
        return _run(True)
    except Exception:
        # Fallback for JAX versions where pipeline_mode=pl.Buffered(1) is not
        # supported on pallas_call BlockSpecs (only the VMEM footprint changes).
        return _run(False)


# ----------------------------------------------------------------------------
# Pure-JAX reference (mirrors the PyTorch module) for validation.
# ----------------------------------------------------------------------------
def reference(x, rotations, translations, params, *, heads, dim_head):
    B, N, dim = x.shape
    inner = heads * dim_head
    scale = dim_head ** (-0.5)

    qkv = x @ params['wqkv'] + params['bqkv']
    q, k, v = jnp.split(qkv, 3, axis=-1)

    def to_heads(t):
        return t.reshape(B, N, heads, dim_head).transpose(0, 2, 1, 3)

    q, k, v = map(to_heads, (q, k, v))

    minv = _invert_se3(rotations, translations)
    mkv = _se3(rotations, translations)

    def add_se3(t, M, query):
        Bh, H, Nn, D = t.shape
        t_ = t.reshape(Bh, H, Nn, -1, 4)
        if query:
            o = jnp.einsum('bnji,bhncj->bhnci', M, t_)
        else:
            o = jnp.einsum('bnij,bhncj->bhnci', M, t_)
        return o.reshape(Bh, H, Nn, D)

    qx = add_se3(q, minv, True)
    kx = add_se3(k, mkv, False)
    vx = add_se3(v, mkv, False)

    sim = jnp.einsum('bhqd,bhkd->bhqk', qx, kx)
    attn = jax.nn.softmax(sim * scale, axis=-1)
    out = jnp.einsum('bhqk,bhkd->bhqd', attn, vx)
    out = add_se3(out, minv, False)
    out = out.transpose(0, 2, 1, 3).reshape(B, N, inner)
    return out @ params['wout'] + params['bout']


# ----------------------------------------------------------------------------
# Deterministic parameter init (JaxLinear: trunc_normal std=sqrt(1/in), bias=0)
# ----------------------------------------------------------------------------
def init_params(key, dim, heads, dim_head):
    inner = heads * dim_head
    k1, k2 = jax.random.split(key)
    std_qkv = math.sqrt(1.0 / dim)
    std_out = math.sqrt(1.0 / inner)
    wqkv = jax.random.truncated_normal(k1, -2.0, 2.0, (dim, 3 * inner),
                                       jnp.float32) * std_qkv
    wout = jax.random.truncated_normal(k2, -2.0, 2.0, (inner, dim),
                                       jnp.float32) * std_out
    return {
        'wqkv': wqkv,
        'bqkv': jnp.zeros((3 * inner,), jnp.float32),
        'wout': wout,
        'bout': jnp.zeros((dim,), jnp.float32),
    }


if __name__ == "__main__":
    def make_inputs(key, B, N, dim):
        kx, kang, kt = jax.random.split(key, 3)
        x = jax.random.normal(kx, (B, N, dim), jnp.float32)
        theta = jax.random.uniform(kang, (B, N), jnp.float32, 0.0, 2.0 * math.pi)
        c, s = jnp.cos(theta), jnp.sin(theta)
        z = jnp.zeros_like(c)
        o = jnp.ones_like(c)
        rotations = jnp.stack(
            [jnp.stack([c, -s, z], axis=-1),
             jnp.stack([s, c, z], axis=-1),
             jnp.stack([z, z, o], axis=-1)], axis=-2)          # [B, N, 3, 3]
        translations = jax.random.normal(kt, (B, N, 3), jnp.float32)
        return x, rotations, translations

    key = jax.random.PRNGKey(0)

    # --- small config -----------------------------------------------------
    B, N, dim, heads, dim_head = 2, 8, 32, 2, 16
    k_in, k_par, key = jax.random.split(key, 3)
    x, rotations, translations = make_inputs(k_in, B, N, dim)
    params = init_params(k_par, dim, heads, dim_head)

    ref = reference(x, rotations, translations, params,
                    heads=heads, dim_head=dim_head)

    out_f32 = invariant_pose_attention(x, rotations, translations, params,
                                       heads=heads, dim_head=dim_head,
                                       compute_dtype=jnp.float32)
    out_f32 = jax.block_until_ready(out_f32)
    assert out_f32.shape == (B, N, dim)
    assert jnp.allclose(out_f32, ref, rtol=1e-3, atol=1e-3), (
        float(jnp.max(jnp.abs(out_f32 - ref))))

    out_bf16 = invariant_pose_attention(x, rotations, translations, params,
                                        heads=heads, dim_head=dim_head,
                                        compute_dtype=jnp.bfloat16)
    out_bf16 = jax.block_until_ready(out_bf16)
    assert jnp.allclose(out_bf16, ref, rtol=1e-1, atol=1e-1), (
        float(jnp.max(jnp.abs(out_bf16 - ref))))

    # --- larger config exercising the query-tile and KV-accumulation axes ---
    B2, N2, dim2, heads2, dim_head2 = 1, 256, 64, 2, 32
    k_in2, k_par2, key = jax.random.split(key, 3)
    x2, rot2, tr2 = make_inputs(k_in2, B2, N2, dim2)
    params2 = init_params(k_par2, dim2, heads2, dim_head2)
    ref2 = reference(x2, rot2, tr2, params2, heads=heads2, dim_head=dim_head2)
    out2 = invariant_pose_attention(x2, rot2, tr2, params2, heads=heads2,
                                    dim_head=dim_head2,
                                    compute_dtype=jnp.float32,
                                    tile_n=64, tile_q=64, tile_kv=64)
    out2 = jax.block_until_ready(out2)
    assert jnp.allclose(out2, ref2, rtol=1e-3, atol=1e-3), (
        float(jnp.max(jnp.abs(out2 - ref2))))

    print("KERNEL_OK")
</pallas_src>

<mosaic_0001>
module attributes {stable_mosaic.version = 11 : i64} {
  func.func @_proj_pose_kernel(%arg0: i32, %arg1: i32, %arg2: memref<1x8x32xf32, #tpu.memory_space<vmem>>, %arg3: memref<1x8x16xf32, #tpu.memory_space<vmem>>, %arg4: memref<1x8x16xf32, #tpu.memory_space<vmem>>, %arg5: memref<32x96xf32, #tpu.memory_space<vmem>>, %arg6: memref<1x96xf32, #tpu.memory_space<vmem>>, %arg7: memref<1x8x32xf32, #tpu.memory_space<vmem>>, %arg8: memref<1x8x32xf32, #tpu.memory_space<vmem>>, %arg9: memref<1x8x32xf32, #tpu.memory_space<vmem>>) attributes {dimension_semantics = [#tpu.dimension_semantics<parallel>, #tpu.dimension_semantics<parallel>], iteration_bounds = array<i64: 2, 1>, scalar_prefetch = 0 : i64, scratch_operands = 0 : i64, tpu.core_type = #tpu.core_type<tc>, window_params = [{transform_indices = @transform_0, window_bounds = array<i64: 1, 8, 32>}, {transform_indices = @transform_1, window_bounds = array<i64: 1, 8, 16>}, {transform_indices = @transform_2, window_bounds = array<i64: 1, 8, 16>}, {pipeline_mode = #tpu.pipeline_mode<synchronous>, transform_indices = @transform_3, window_bounds = array<i64: 32, 96>}, {pipeline_mode = #tpu.pipeline_mode<synchronous>, transform_indices = @transform_4, window_bounds = array<i64: 1, 96>}, {transform_indices = @transform_5, window_bounds = array<i64: 1, 8, 32>}, {transform_indices = @transform_6, window_bounds = array<i64: 1, 8, 32>}, {transform_indices = @transform_7, window_bounds = array<i64: 1, 8, 32>}]} {
    %c0 = arith.constant 0 : index
    %c0_0 = arith.constant 0 : index
    %c0_1 = arith.constant 0 : index
    %0 = vector.load %arg3[%c0, %c0_0, %c0_1] : memref<1x8x16xf32, #tpu.memory_space<vmem>>, vector<1x8x16xf32>
    %1 = vector.shape_cast %0 : vector<1x8x16xf32> to vector<8x16xf32>
    %c0_2 = arith.constant 0 : index
    %c0_3 = arith.constant 0 : index
    %c0_4 = arith.constant 0 : index
    %2 = vector.load %arg4[%c0_2, %c0_3, %c0_4] : memref<1x8x16xf32, #tpu.memory_space<vmem>>, vector<1x8x16xf32>
    %3 = vector.shape_cast %2 : vector<1x8x16xf32> to vector<8x16xf32>
    %c0_5 = arith.constant 0 : index
    %c0_6 = arith.constant 0 : index
    %c0_7 = arith.constant 0 : index
    %4 = vector.load %arg2[%c0_5, %c0_6, %c0_7] : memref<1x8x32xf32, #tpu.memory_space<vmem>>, vector<1x8x32xf32>
    %5 = vector.shape_cast %4 : vector<1x8x32xf32> to vector<8x32xf32>
    %c0_8 = arith.constant 0 : index
    %c0_9 = arith.constant 0 : index
    %6 = vector.load %arg5[%c0_8, %c0_9] : memref<32x96xf32, #tpu.memory_space<vmem>>, vector<32x96xf32>
    %cst = arith.constant dense<0.000000e+00> : vector<8x96xf32>
    %7 = tpu.matmul %5, %6, %cst {dimension_numbers = #tpu.dot_dimension_numbers<[1], [0], [0], [1], [0, 0, 1, 1], [], []>} : vector<8x32xf32>, vector<32x96xf32>, vector<8x96xf32> -> vector<8x96xf32>
    %c0_10 = arith.constant 0 : index
    %c0_11 = arith.constant 0 : index
    %8 = vector.load %arg6[%c0_10, %c0_11] : memref<1x96xf32, #tpu.memory_space<vmem>>, vector<1x96xf32>
    %9 = vector.broadcast %8 : vector<1x96xf32> to vector<8x96xf32>
    %10 = arith.addf %7, %9 : vector<8x96xf32>
    %11 = vector.extract_strided_slice %10 {offsets = [0, 0], sizes = [8, 8], strides = [1, 1]} : vector<8x96xf32> to vector<8x8xf32>
    %12 = vector.extract_strided_slice %10 {offsets = [0, 8], sizes = [8, 8], strides = [1, 1]} : vector<8x96xf32> to vector<8x8xf32>
    %13 = vector.extract_strided_slice %10 {offsets = [0, 16], sizes = [8, 8], strides = [1, 1]} : vector<8x96xf32> to vector<8x8xf32>
    %14 = vector.extract_strided_slice %10 {offsets = [0, 24], sizes = [8, 8], strides = [1, 1]} : vector<8x96xf32> to vector<8x8xf32>
    %15 = vector.extract_strided_slice %10 {offsets = [0, 32], sizes = [8, 16], strides = [1, 1]} : vector<8x96xf32> to vector<8x16xf32>
    %16 = vector.extract_strided_slice %10 {offsets = [0, 48], sizes = [8, 16], strides = [1, 1]} : vector<8x96xf32> to vector<8x16xf32>
    %17 = vector.extract_strided_slice %10 {offsets = [0, 64], sizes = [8, 16], strides = [1, 1]} : vector<8x96xf32> to vector<8x16xf32>
    %18 = vector.extract_strided_slice %10 {offsets = [0, 80], sizes = [8, 16], strides = [1, 1]} : vector<8x96xf32> to vector<8x16xf32>
    %19 = vector.extract_strided_slice %1 {offsets = [0, 0], sizes = [8, 1], strides = [1, 1]} : vector<8x16xf32> to vector<8x1xf32>
    %20 = vector.broadcast %19 : vector<8x1xf32> to vector<8x8xf32>
    %21 = arith.mulf %20, %11 : vector<8x8xf32>
    %22 = vector.extract_strided_slice %1 {offsets = [0, 4], sizes = [8, 1], strides = [1, 1]} : vector<8x16xf32> to vector<8x1xf32>
    %23 = vector.broadcast %22 : vector<8x1xf32> to vector<8x8xf32>
    %24 = arith.mulf %23, %12 : vector<8x8xf32>
    %25 = arith.addf %21, %24 : vector<8x8xf32>
    %26 = vector.extract_strided_slice %1 {offsets = [0, 8], sizes = [8, 1], strides = [1, 1]} : vector<8x16xf32> to vector<8x1xf32>
    %27 = vector.broadcast %26 : vector<8x1xf32> to vector<8x8xf32>
    %28 = arith.mulf %27, %13 : vector<8x8xf32>
    %29 = arith.addf %25, %28 : vector<8x8xf32>
    %30 = vector.extract_strided_slice %1 {offsets = [0, 1], sizes = [8, 1], strides = [1, 1]} : vector<8x16xf32> to vector<8x1xf32>
    %31 = vector.broadcast %30 : vector<8x1xf32> to vector<8x8xf32>
    %32 = arith.mulf %31, %11 : vector<8x8xf32>
    %33 = vector.extract_strided_slice %1 {offsets = [0, 5], sizes = [8, 1], strides = [1, 1]} : vector<8x16xf32> to vector<8x1xf32>
    %34 = vector.broadcast %33 : vector<8x1xf32> to vector<8x8xf32>
    %35 = arith.mulf %34, %12 : vector<8x8xf32>
    %36 = arith.addf %32, %35 : vector<8x8xf32>
    %37 = vector.extract_strided_slice %1 {offsets = [0, 9], sizes = [8, 1], strides = [1, 1]} : vector<8x16xf32> to vector<8x1xf32>
    %38 = vector.broadcast %37 : vector<8x1xf32> to vector<8x8xf32>
    %39 = arith.mulf %38, %13 : vector<8x8xf32>
    %40 = arith.addf %36, %39 : vector<8x8xf32>
    %41 = vector.extract_strided_slice %1 {offsets = [0, 2], sizes = [8, 1], strides = [1, 1]} : vector<8x16xf32> to vector<8x1xf32>
    %42 = vector.broadcast %41 : vector<8x1xf32> to vector<8x8xf32>
    %43 = arith.mulf %42, %11 : vector<8x8xf32>
    %44 = vector.extract_strided_slice %1 {offsets = [0, 6], sizes = [8, 1], strides = [1, 1]} : vector<8x16xf32> to vector<8x1xf32>
    %45 = vector.broadcast %44 : vector<8x1xf32> to vector<8x8xf32>
    %46 = arith.mulf %45, %12 : vector<8x8xf32>
    %47 = arith.addf %43, %46 : vector<8x8xf32>
    %48 = vector.extract_strided_slice %1 {offsets = [0, 10], sizes = [8, 1], strides = [1, 1]} : vector<8x16xf32> to vector<8x1xf32>
    %49 = vector.broadcast %48 : vector<8x1xf32> to vector<8x8xf32>
    %50 = arith.mulf %49, %13 : vector<8x8xf32>
    %51 = arith.addf %47, %50 : vector<8x8xf32>
    %52 = vector.extract_strided_slice %1 {offsets = [0, 3], sizes = [8, 1], strides = [1, 1]} : vector<8x16xf32> to vector<8x1xf32>
    %53 = vector.broadcast %52 : vector<8x1xf32> to vector<8x8xf32>
    %54 = arith.mulf %53, %11 : vector<8x8xf32>
    %55 = arith.addf %14, %54 : vector<8x8xf32>
    %56 = vector.extract_strided_slice %1 {offsets = [0, 7], sizes = [8, 1], strides = [1, 1]} : vector<8x16xf32> to vector<8x1xf32>
    %57 = vector.broadcast %56 : vector<8x1xf32> to vector<8x8xf32>
    %58 = arith.mulf %57, %12 : vector<8x8xf32>
    %59 = arith.addf %55, %58 : vector<8x8xf32>
    %60 = vector.extract_strided_slice %1 {offsets = [0, 11], sizes = [8, 1], strides = [1, 1]} : vector<8x16xf32> to vector<8x1xf32>
    %61 = vector.broadcast %60 : vector<8x1xf32> to vector<8x8xf32>
    %62 = arith.mulf %61, %13 : vector<8x8xf32>
    %63 = arith.addf %59, %62 : vector<8x8xf32>
    %64 = vector.extract_strided_slice %3 {offsets = [0, 0], sizes = [8, 1], strides = [1, 1]} : vector<8x16xf32> to vector<8x1xf32>
    %65 = vector.broadcast %64 : vector<8x1xf32> to vector<8x16xf32>
    %66 = arith.mulf %65, %15 : vector<8x16xf32>
    %67 = vector.extract_strided_slice %3 {offsets = [0, 1], sizes = [8, 1], strides = [1, 1]} : vector<8x16xf32> to vector<8x1xf32>
    %68 = vector.broadcast %67 : vector<8x1xf32> to vector<8x16xf32>
    %69 = arith.mulf %68, %16 : vector<8x16xf32>
    %70 = arith.addf %66, %69 : vector<8x16xf32>
    %71 = vector.extract_strided_slice %3 {offsets = [0, 2], sizes = [8, 1], strides = [1, 1]} : vector<8x16xf32> to vector<8x1xf32>
    %72 = vector.broadcast %71 : vector<8x1xf32> to vector<8x16xf32>
    %73 = arith.mulf %72, %17 : vector<8x16xf32>
    %74 = arith.addf %70, %73 : vector<8x16xf32>
    %75 = vector.extract_strided_slice %3 {offsets = [0, 3], sizes = [8, 1], strides = [1, 1]} : vector<8x16xf32> to vector<8x1xf32>
    %76 = vector.broadcast %75 : vector<8x1xf32> to vector<8x16xf32>
    %77 = arith.mulf %76, %18 : vector<8x16xf32>
    %78 = arith.addf %74, %77 : vector<8x16xf32>
    %79 = vector.extract_strided_slice %3 {offsets = [0, 4], sizes = [8, 1], strides = [1, 1]} : vector<8x16xf32> to vector<8x1xf32>
    %80 = vector.broadcast %79 : vector<8x1xf32> to vector<8x16xf32>
    %81 = arith.mulf %80, %15 : vector<8x16xf32>
    %82 = vector.extract_strided_slice %3 {offsets = [0, 5], sizes = [8, 1], strides = [1, 1]} : vector<8x16xf32> to vector<8x1xf32>
    %83 = vector.broadcast %82 : vector<8x1xf32> to vector<8x16xf32>
    %84 = arith.mulf %83, %16 : vector<8x16xf32>
    %85 = arith.addf %81, %84 : vector<8x16xf32>
    %86 = vector.extract_strided_slice %3 {offsets = [0, 6], sizes = [8, 1], strides = [1, 1]} : vector<8x16xf32> to vector<8x1xf32>
    %87 = vector.broadcast %86 : vector<8x1xf32> to vector<8x16xf32>
    %88 = arith.mulf %87, %17 : vector<8x16xf32>
    %89 = arith.addf %85, %88 : vector<8x16xf32>
    %90 = vector.extract_strided_slice %3 {offsets = [0, 7], sizes = [8, 1], strides = [1, 1]} : vector<8x16xf32> to vector<8x1xf32>
    %91 = vector.broadcast %90 : vector<8x1xf32> to vector<8x16xf32>
    %92 = arith.mulf %91, %18 : vector<8x16xf32>
    %93 = arith.addf %89, %92 : vector<8x16xf32>
    %94 = vector.extract_strided_slice %3 {offsets = [0, 8], sizes = [8, 1], strides = [1, 1]} : vector<8x16xf32> to vector<8x1xf32>
    %95 = vector.broadcast %94 : vector<8x1xf32> to vector<8x16xf32>
    %96 = arith.mulf %95, %15 : vector<8x16xf32>
    %97 = vector.extract_strided_slice %3 {offsets = [0, 9], sizes = [8, 1], strides = [1, 1]} : vector<8x16xf32> to vector<8x1xf32>
    %98 = vector.broadcast %97 : vector<8x1xf32> to vector<8x16xf32>
    %99 = arith.mulf %98, %16 : vector<8x16xf32>
    %100 = arith.addf %96, %99 : vector<8x16xf32>
    %101 = vector.extract_strided_slice %3 {offsets = [0, 10], sizes = [8, 1], strides = [1, 1]} : vector<8x16xf32> to vector<8x1xf32>
    %102 = vector.broadcast %101 : vector<8x1xf32> to vector<8x16xf32>
    %103 = arith.mulf %102, %17 : vector<8x16xf32>
    %104 = arith.addf %100, %103 : vector<8x16xf32>
    %105 = vector.extract_strided_slice %3 {offsets = [0, 11], sizes = [8, 1], strides = [1, 1]} : vector<8x16xf32> to vector<8x1xf32>
    %106 = vector.broadcast %105 : vector<8x1xf32> to vector<8x16xf32>
    %107 = arith.mulf %106, %18 : vector<8x16xf32>
    %108 = arith.addf %104, %107 : vector<8x16xf32>
    %109 = vector.extract_strided_slice %29 {offsets = [0, 0], sizes = [8, 4], strides = [1, 1]} : vector<8x8xf32> to vector<8x4xf32>
    %110 = vector.extract_strided_slice %40 {offsets = [0, 0], sizes = [8, 4], strides = [1, 1]} : vector<8x8xf32> to vector<8x4xf32>
    %111 = vector.extract_strided_slice %51 {offsets = [0, 0], sizes = [8, 4], strides = [1, 1]} : vector<8x8xf32> to vector<8x4xf32>
    %112 = vector.extract_strided_slice %63 {offsets = [0, 0], sizes = [8, 4], strides = [1, 1]} : vector<8x8xf32> to vector<8x4xf32>
    %113 = vector.extract_strided_slice %29 {offsets = [0, 4], sizes = [8, 4], strides = [1, 1]} : vector<8x8xf32> to vector<8x4xf32>
    %114 = vector.extract_strided_slice %40 {offsets = [0, 4], sizes = [8, 4], strides = [1, 1]} : vector<8x8xf32> to vector<8x4xf32>
    %115 = vector.extract_strided_slice %51 {offsets = [0, 4], sizes = [8, 4], strides = [1, 1]} : vector<8x8xf32> to vector<8x4xf32>
    %116 = vector.extract_strided_slice %63 {offsets = [0, 4], sizes = [8, 4], strides = [1, 1]} : vector<8x8xf32> to vector<8x4xf32>
    %117 = tpu.concatenate %109, %110, %111, %112, %113, %114, %115, %116 in 1 : vector<8x4xf32>, vector<8x4xf32>, vector<8x4xf32>, vector<8x4xf32>, vector<8x4xf32>, vector<8x4xf32>, vector<8x4xf32>, vector<8x4xf32> -> vector<8x32xf32>
    %c0_12 = arith.constant 0 : index
    %c0_13 = arith.constant 0 : index
    %c0_14 = arith.constant 0 : index
    %118 = vector.load %arg7[%c0_12, %c0_13, %c0_14] : memref<1x8x32xf32, #tpu.memory_space<vmem>>, vector<1x8x32xf32>
    %119 = vector.shape_cast %118 : vector<1x8x32xf32> to vector<8x32xf32>
    %120 = vector.shape_cast %117 : vector<8x32xf32> to vector<1x8x32xf32>
    tpu.vector_store %arg7[%c0_12, %c0_13, %c0_14], %120 {strides = array<i32>} : memref<1x8x32xf32, #tpu.memory_space<vmem>>, vector<1x8x32xf32>,
    %121 = vector.extract_strided_slice %78 {offsets = [0, 0], sizes = [8, 4], strides = [1, 1]} : vector<8x16xf32> to vector<8x4xf32>
    %122 = vector.extract_strided_slice %93 {offsets = [0, 0], sizes = [8, 4], strides = [1, 1]} : vector<8x16xf32> to vector<8x4xf32>
    %123 = vector.extract_strided_slice %108 {offsets = [0, 0], sizes = [8, 4], strides = [1, 1]} : vector<8x16xf32> to vector<8x4xf32>
    %124 = vector.extract_strided_slice %18 {offsets = [0, 0], sizes = [8, 4], strides = [1, 1]} : vector<8x16xf32> to vector<8x4xf32>
    %125 = vector.extract_strided_slice %78 {offsets = [0, 4], sizes = [8, 4], strides = [1, 1]} : vector<8x16xf32> to vector<8x4xf32>
    %126 = vector.extract_strided_slice %93 {offsets = [0, 4], sizes = [8, 4], strides = [1, 1]} : vector<8x16xf32> to vector<8x4xf32>
    %127 = vector.extract_strided_slice %108 {offsets = [0, 4], sizes = [8, 4], strides = [1, 1]} : vector<8x16xf32> to vector<8x4xf32>
    %128 = vector.extract_strided_slice %18 {offsets = [0, 4], sizes = [8, 4], strides = [1, 1]} : vector<8x16xf32> to vector<8x4xf32>
    %129 = tpu.concatenate %121, %122, %123, %124, %125, %126, %127, %128 in 1 : vector<8x4xf32>, vector<8x4xf32>, vector<8x4xf32>, vector<8x4xf32>, vector<8x4xf32>, vector<8x4xf32>, vector<8x4xf32>, vector<8x4xf32> -> vector<8x32xf32>
    %c0_15 = arith.constant 0 : index
    %c0_16 = arith.constant 0 : index
    %c0_17 = arith.constant 0 : index
    %130 = vector.load %arg8[%c0_15, %c0_16, %c0_17] : memref<1x8x32xf32, #tpu.memory_space<vmem>>, vector<1x8x32xf32>
    %131 = vector.shape_cast %130 : vector<1x8x32xf32> to vector<8x32xf32>
    %132 = vector.shape_cast %129 : vector<8x32xf32> to vector<1x8x32xf32>
    tpu.vector_store %arg8[%c0_15, %c0_16, %c0_17], %132 {strides = array<i32>} : memref<1x8x32xf32, #tpu.memory_space<vmem>>, vector<1x8x32xf32>,
    %133 = vector.extract_strided_slice %78 {offsets = [0, 8], sizes = [8, 4], strides = [1, 1]} : vector<8x16xf32> to vector<8x4xf32>
    %134 = vector.extract_strided_slice %93 {offsets = [0, 8], sizes = [8, 4], strides = [1, 1]} : vector<8x16xf32> to vector<8x4xf32>
    %135 = vector.extract_strided_slice %108 {offsets = [0, 8], sizes = [8, 4], strides = [1, 1]} : vector<8x16xf32> to vector<8x4xf32>
    %136 = vector.extract_strided_slice %18 {offsets = [0, 8], sizes = [8, 4], strides = [1, 1]} : vector<8x16xf32> to vector<8x4xf32>
    %137 = vector.extract_strided_slice %78 {offsets = [0, 12], sizes = [8, 4], strides = [1, 1]} : vector<8x16xf32> to vector<8x4xf32>
    %138 = vector.extract_strided_slice %93 {offsets = [0, 12], sizes = [8, 4], strides = [1, 1]} : vector<8x16xf32> to vector<8x4xf32>
    %139 = vector.extract_strided_slice %108 {offsets = [0, 12], sizes = [8, 4], strides = [1, 1]} : vector<8x16xf32> to vector<8x4xf32>
    %140 = vector.extract_strided_slice %18 {offsets = [0, 12], sizes = [8, 4], strides = [1, 1]} : vector<8x16xf32> to vector<8x4xf32>
    %141 = tpu.concatenate %133, %134, %135, %136, %137, %138, %139, %140 in 1 : vector<8x4xf32>, vector<8x4xf32>, vector<8x4xf32>, vector<8x4xf32>, vector<8x4xf32>, vector<8x4xf32>, vector<8x4xf32>, vector<8x4xf32> -> vector<8x32xf32>
    %c0_18 = arith.constant 0 : index
    %c0_19 = arith.constant 0 : index
    %c0_20 = arith.constant 0 : index
    %142 = vector.load %arg9[%c0_18, %c0_19, %c0_20] : memref<1x8x32xf32, #tpu.memory_space<vmem>>, vector<1x8x32xf32>
    %143 = vector.shape_cast %142 : vector<1x8x32xf32> to vector<8x32xf32>
    %144 = vector.shape_cast %141 : vector<8x32xf32> to vector<1x8x32xf32>
    tpu.vector_store %arg9[%c0_18, %c0_19, %c0_20], %144 {strides = array<i32>} : memref<1x8x32xf32, #tpu.memory_space<vmem>>, vector<1x8x32xf32>,
    return
  }
  func.func @transform_0(%arg0: i32, %arg1: i32) -> (i32, i32, i32) {
    %c0_i32 = arith.constant 0 : i32
    %c0_i32_0 = arith.constant 0 : i32
    return %arg0, %arg1, %c0_i32 : i32, i32, i32
  }
  func.func @transform_1(%arg0: i32, %arg1: i32) -> (i32, i32, i32) {
    %c0_i32 = arith.constant 0 : i32
    %c0_i32_0 = arith.constant 0 : i32
    return %arg0, %arg1, %c0_i32 : i32, i32, i32
  }
  func.func @transform_2(%arg0: i32, %arg1: i32) -> (i32, i32, i32) {
    %c0_i32 = arith.constant 0 : i32
    %c0_i32_0 = arith.constant 0 : i32
    return %arg0, %arg1, %c0_i32 : i32, i32, i32
  }
  func.func @transform_3(%arg0: i32, %arg1: i32) -> (i32, i32) {
    %c0_i32 = arith.constant 0 : i32
    %c0_i32_0 = arith.constant 0 : i32
    %c0_i32_1 = arith.constant 0 : i32
    return %c0_i32, %c0_i32_0 : i32, i32
  }
  func.func @transform_4(%arg0: i32, %arg1: i32) -> (i32, i32) {
    %c0_i32 = arith.constant 0 : i32
    %c0_i32_0 = arith.constant 0 : i32
    %c0_i32_1 = arith.constant 0 : i32
    return %c0_i32, %c0_i32_0 : i32, i32
  }
  func.func @transform_5(%arg0: i32, %arg1: i32) -> (i32, i32, i32) {
    %c0_i32 = arith.constant 0 : i32
    %c0_i32_0 = arith.constant 0 : i32
    return %arg0, %arg1, %c0_i32 : i32, i32, i32
  }
  func.func @transform_6(%arg0: i32, %arg1: i32) -> (i32, i32, i32) {
    %c0_i32 = arith.constant 0 : i32
    %c0_i32_0 = arith.constant 0 : i32
    return %arg0, %arg1, %c0_i32 : i32, i32, i32
  }
  func.func @transform_7(%arg0: i32, %arg1: i32) -> (i32, i32, i32) {
    %c0_i32 = arith.constant 0 : i32
    %c0_i32_0 = arith.constant 0 : i32
    return %arg0, %arg1, %c0_i32 : i32, i32, i32
  }
}

module attributes {stable_mosaic.version = 11 : i64} {
  func.func @_proj_pose_kernel(%arg0: i32, %arg1: i32, %arg2: memref<1x8x32xf32, #tpu.memory_space<vmem>>, %arg3: memref<1x8x16xf32, #tpu.memory_space<vmem>>, %arg4: memref<1x8x16xf32, #tpu.memory_space<vmem>>, %arg5: memref<32x96xf32, #tpu.memory_space<vmem>>, %arg6: memref<1x96xf32, #tpu.memory_space<vmem>>, %arg7: memref<1x8x32xf32, #tpu.memory_space<vmem>>, %arg8: memref<1x8x32xf32, #tpu.memory_space<vmem>>, %arg9: memref<1x8x32xf32, #tpu.memory_space<vmem>>) attributes {dimension_semantics = [#tpu.dimension_semantics<parallel>, #tpu.dimension_semantics<parallel>], iteration_bounds = array<i64: 2, 1>, scalar_prefetch = 0 : i64, scratch_operands = 0 : i64, tpu.core_type = #tpu.core_type<tc>, window_params = [{transform_indices = @transform_0, window_bounds = array<i64: 1, 8, 32>}, {transform_indices = @transform_1, window_bounds = array<i64: 1, 8, 16>}, {transform_indices = @transform_2, window_bounds = array<i64: 1, 8, 16>}, {pipeline_mode = #tpu.pipeline_mode<synchronous>, transform_indices = @transform_3, window_bounds = array<i64: 32, 96>}, {pipeline_mode = #tpu.pipeline_mode<synchronous>, transform_indices = @transform_4, window_bounds = array<i64: 1, 96>}, {transform_indices = @transform_5, window_bounds = array<i64: 1, 8, 32>}, {transform_indices = @transform_6, window_bounds = array<i64: 1, 8, 32>}, {transform_indices = @transform_7, window_bounds = array<i64: 1, 8, 32>}]} {
    %c0 = arith.constant 0 : index
    %c0_0 = arith.constant 0 : index
    %c0_1 = arith.constant 0 : index
    %0 = vector.load %arg3[%c0, %c0_0, %c0_1] : memref<1x8x16xf32, #tpu.memory_space<vmem>>, vector<1x8x16xf32>
    %1 = vector.shape_cast %0 : vector<1x8x16xf32> to vector<8x16xf32>
    %c0_2 = arith.constant 0 : index
    %c0_3 = arith.constant 0 : index
    %c0_4 = arith.constant 0 : index
    %2 = vector.load %arg4[%c0_2, %c0_3, %c0_4] : memref<1x8x16xf32, #tpu.memory_space<vmem>>, vector<1x8x16xf32>
    %3 = vector.shape_cast %2 : vector<1x8x16xf32> to vector<8x16xf32>
    %c0_5 = arith.constant 0 : index
    %c0_6 = arith.constant 0 : index
    %c0_7 = arith.constant 0 : index
    %4 = vector.load %arg2[%c0_5, %c0_6, %c0_7] : memref<1x8x32xf32, #tpu.memory_space<vmem>>, vector<1x8x32xf32>
    %5 = vector.shape_cast %4 : vector<1x8x32xf32> to vector<8x32xf32>
    %c0_8 = arith.constant 0 : index
    %c0_9 = arith.constant 0 : index
    %6 = vector.load %arg5[%c0_8, %c0_9] : memref<32x96xf32, #tpu.memory_space<vmem>>, vector<32x96xf32>
    %cst = arith.constant dense<0.000000e+00> : vector<8x96xf32>
    %7 = tpu.matmul %5, %6, %cst {dimension_numbers = #tpu.dot_dimension_numbers<[1], [0], [0], [1], [0, 0, 1, 1], [], []>} : vector<8x32xf32>, vector<32x96xf32>, vector<8x96xf32> -> vector<8x96xf32>
    %c0_10 = arith.constant 0 : index
    %c0_11 = arith.constant 0 : index
    %8 = vector.load %arg6[%c0_10, %c0_11] : memref<1x96xf32, #tpu.memory_space<vmem>>, vector<1x96xf32>
    %9 = vector.broadcast %8 : vector<1x96xf32> to vector<8x96xf32>
    %10 = arith.addf %7, %9 : vector<8x96xf32>
    %11 = vector.extract_strided_slice %10 {offsets = [0, 0], sizes = [8, 8], strides = [1, 1]} : vector<8x96xf32> to vector<8x8xf32>
    %12 = vector.extract_strided_slice %10 {offsets = [0, 8], sizes = [8, 8], strides = [1, 1]} : vector<8x96xf32> to vector<8x8xf32>
    %13 = vector.extract_strided_slice %10 {offsets = [0, 16], sizes = [8, 8], strides = [1, 1]} : vector<8x96xf32> to vector<8x8xf32>
    %14 = vector.extract_strided_slice %10 {offsets = [0, 24], sizes = [8, 8], strides = [1, 1]} : vector<8x96xf32> to vector<8x8xf32>
    %15 = vector.extract_strided_slice %10 {offsets = [0, 32], sizes = [8, 16], strides = [1, 1]} : vector<8x96xf32> to vector<8x16xf32>
    %16 = vector.extract_strided_slice %10 {offsets = [0, 48], sizes = [8, 16], strides = [1, 1]} : vector<8x96xf32> to vector<8x16xf32>
    %17 = vector.extract_strided_slice %10 {offsets = [0, 64], sizes = [8, 16], strides = [1, 1]} : vector<8x96xf32> to vector<8x16xf32>
    %18 = vector.extract_strided_slice %10 {offsets = [0, 80], sizes = [8, 16], strides = [1, 1]} : vector<8x96xf32> to vector<8x16xf32>
    %19 = vector.extract_strided_slice %1 {offsets = [0, 0], sizes = [8, 1], strides = [1, 1]} : vector<8x16xf32> to vector<8x1xf32>
    %20 = vector.broadcast %19 : vector<8x1xf32> to vector<8x8xf32>
    %21 = arith.mulf %20, %11 : vector<8x8xf32>
    %22 = vector.extract_strided_slice %1 {offsets = [0, 4], sizes = [8, 1], strides = [1, 1]} : vector<8x16xf32> to vector<8x1xf32>
    %23 = vector.broadcast %22 : vector<8x1xf32> to vector<8x8xf32>
    %24 = arith.mulf %23, %12 : vector<8x8xf32>
    %25 = arith.addf %21, %24 : vector<8x8xf32>
    %26 = vector.extract_strided_slice %1 {offsets = [0, 8], sizes = [8, 1], strides = [1, 1]} : vector<8x16xf32> to vector<8x1xf32>
    %27 = vector.broadcast %26 : vector<8x1xf32> to vector<8x8xf32>
    %28 = arith.mulf %27, %13 : vector<8x8xf32>
    %29 = arith.addf %25, %28 : vector<8x8xf32>
    %30 = vector.extract_strided_slice %1 {offsets = [0, 1], sizes = [8, 1], strides = [1, 1]} : vector<8x16xf32> to vector<8x1xf32>
    %31 = vector.broadcast %30 : vector<8x1xf32> to vector<8x8xf32>
    %32 = arith.mulf %31, %11 : vector<8x8xf32>
    %33 = vector.extract_strided_slice %1 {offsets = [0, 5], sizes = [8, 1], strides = [1, 1]} : vector<8x16xf32> to vector<8x1xf32>
    %34 = vector.broadcast %33 : vector<8x1xf32> to vector<8x8xf32>
    %35 = arith.mulf %34, %12 : vector<8x8xf32>
    %36 = arith.addf %32, %35 : vector<8x8xf32>
    %37 = vector.extract_strided_slice %1 {offsets = [0, 9], sizes = [8, 1], strides = [1, 1]} : vector<8x16xf32> to vector<8x1xf32>
    %38 = vector.broadcast %37 : vector<8x1xf32> to vector<8x8xf32>
    %39 = arith.mulf %38, %13 : vector<8x8xf32>
    %40 = arith.addf %36, %39 : vector<8x8xf32>
    %41 = vector.extract_strided_slice %1 {offsets = [0, 2], sizes = [8, 1], strides = [1, 1]} : vector<8x16xf32> to vector<8x1xf32>
    %42 = vector.broadcast %41 : vector<8x1xf32> to vector<8x8xf32>
    %43 = arith.mulf %42, %11 : vector<8x8xf32>
    %44 = vector.extract_strided_slice %1 {offsets = [0, 6], sizes = [8, 1], strides = [1, 1]} : vector<8x16xf32> to vector<8x1xf32>
    %45 = vector.broadcast %44 : vector<8x1xf32> to vector<8x8xf32>
    %46 = arith.mulf %45, %12 : vector<8x8xf32>
    %47 = arith.addf %43, %46 : vector<8x8xf32>
    %48 = vector.extract_strided_slice %1 {offsets = [0, 10], sizes = [8, 1], strides = [1, 1]} : vector<8x16xf32> to vector<8x1xf32>
    %49 = vector.broadcast %48 : vector<8x1xf32> to vector<8x8xf32>
    %50 = arith.mulf %49, %13 : vector<8x8xf32>
    %51 = arith.addf %47, %50 : vector<8x8xf32>
    %52 = vector.extract_strided_slice %1 {offsets = [0, 3], sizes = [8, 1], strides = [1, 1]} : vector<8x16xf32> to vector<8x1xf32>
    %53 = vector.broadcast %52 : vector<8x1xf32> to vector<8x8xf32>
    %54 = arith.mulf %53, %11 : vector<8x8xf32>
    %55 = arith.addf %14, %54 : vector<8x8xf32>
    %56 = vector.extract_strided_slice %1 {offsets = [0, 7], sizes = [8, 1], strides = [1, 1]} : vector<8x16xf32> to vector<8x1xf32>
    %57 = vector.broadcast %56 : vector<8x1xf32> to vector<8x8xf32>
    %58 = arith.mulf %57, %12 : vector<8x8xf32>
    %59 = arith.addf %55, %58 : vector<8x8xf32>
    %60 = vector.extract_strided_slice %1 {offsets = [0, 11], sizes = [8, 1], strides = [1, 1]} : vector<8x16xf32> to vector<8x1xf32>
    %61 = vector.broadcast %60 : vector<8x1xf32> to vector<8x8xf32>
    %62 = arith.mulf %61, %13 : vector<8x8xf32>
    %63 = arith.addf %59, %62 : vector<8x8xf32>
    %64 = vector.extract_strided_slice %3 {offsets = [0, 0], sizes = [8, 1], strides = [1, 1]} : vector<8x16xf32> to vector<8x1xf32>
    %65 = vector.broadcast %64 : vector<8x1xf32> to vector<8x16xf32>
    %66 = arith.mulf %65, %15 : vector<8x16xf32>
    %67 = vector.extract_strided_slice %3 {offsets = [0, 1], sizes = [8, 1], strides = [1, 1]} : vector<8x16xf32> to vector<8x1xf32>
    %68 = vector.broadcast %67 : vector<8x1xf32> to vector<8x16xf32>
    %69 = arith.mulf %68, %16 : vector<8x16xf32>
    %70 = arith.addf %66, %69 : vector<8x16xf32>
    %71 = vector.extract_strided_slice %3 {offsets = [0, 2], sizes = [8, 1], strides = [1, 1]} : vector<8x16xf32> to vector<8x1xf32>
    %72 = vector.broadcast %71 : vector<8x1xf32> to vector<8x16xf32>
    %73 = arith.mulf %72, %17 : vector<8x16xf32>
    %74 = arith.addf %70, %73 : vector<8x16xf32>
    %75 = vector.extract_strided_slice %3 {offsets = [0, 3], sizes = [8, 1], strides = [1, 1]} : vector<8x16xf32> to vector<8x1xf32>
    %76 = vector.broadcast %75 : vector<8x1xf32> to vector<8x16xf32>
    %77 = arith.mulf %76, %18 : vector<8x16xf32>
    %78 = arith.addf %74, %77 : vector<8x16xf32>
    %79 = vector.extract_strided_slice %3 {offsets = [0, 4], sizes = [8, 1], strides = [1, 1]} : vector<8x16xf32> to vector<8x1xf32>
    %80 = vector.broadcast %79 : vector<8x1xf32> to vector<8x16xf32>
    %81 = arith.mulf %80, %15 : vector<8x16xf32>
    %82 = vector.extract_strided_slice %3 {offsets = [0, 5], sizes = [8, 1], strides = [1, 1]} : vector<8x16xf32> to vector<8x1xf32>
    %83 = vector.broadcast %82 : vector<8x1xf32> to vector<8x16xf32>
    %84 = arith.mulf %83, %16 : vector<8x16xf32>
    %85 = arith.addf %81, %84 : vector<8x16xf32>
    %86 = vector.extract_strided_slice %3 {offsets = [0, 6], sizes = [8, 1], strides = [1, 1]} : vector<8x16xf32> to vector<8x1xf32>
    %87 = vector.broadcast %86 : vector<8x1xf32> to vector<8x16xf32>
    %88 = arith.mulf %87, %17 : vector<8x16xf32>
    %89 = arith.addf %85, %88 : vector<8x16xf32>
    %90 = vector.extract_strided_slice %3 {offsets = [0, 7], sizes = [8, 1], strides = [1, 1]} : vector<8x16xf32> to vector<8x1xf32>
    %91 = vector.broadcast %90 : vector<8x1xf32> to vector<8x16xf32>
    %92 = arith.mulf %91, %18 : vector<8x16xf32>
    %93 = arith.addf %89, %92 : vector<8x16xf32>
    %94 = vector.extract_strided_slice %3 {offsets = [0, 8], sizes = [8, 1], strides = [1, 1]} : vector<8x16xf32> to vector<8x1xf32>
    %95 = vector.broadcast %94 : vector<8x1xf32> to vector<8x16xf32>
    %96 = arith.mulf %95, %15 : vector<8x16xf32>
    %97 = vector.extract_strided_slice %3 {offsets = [0, 9], sizes = [8, 1], strides = [1, 1]} : vector<8x16xf32> to vector<8x1xf32>
    %98 = vector.broadcast %97 : vector<8x1xf32> to vector<8x16xf32>
    %99 = arith.mulf %98, %16 : vector<8x16xf32>
    %100 = arith.addf %96, %99 : vector<8x16xf32>
    %101 = vector.extract_strided_slice %3 {offsets = [0, 10], sizes = [8, 1], strides = [1, 1]} : vector<8x16xf32> to vector<8x1xf32>
    %102 = vector.broadcast %101 : vector<8x1xf32> to vector<8x16xf32>
    %103 = arith.mulf %102, %17 : vector<8x16xf32>
    %104 = arith.addf %100, %103 : vector<8x16xf32>
    %105 = vector.extract_strided_slice %3 {offsets = [0, 11], sizes = [8, 1], strides = [1, 1]} : vector<8x16xf32> to vector<8x1xf32>
    %106 = vector.broadcast %105 : vector<8x1xf32> to vector<8x16xf32>
    %107 = arith.mulf %106, %18 : vector<8x16xf32>
    %108 = arith.addf %104, %107 : vector<8x16xf32>
    %109 = vector.extract_strided_slice %29 {offsets = [0, 0], sizes = [8, 4], strides = [1, 1]} : vector<8x8xf32> to vector<8x4xf32>
    %110 = vector.extract_strided_slice %40 {offsets = [0, 0], sizes = [8, 4], strides = [1, 1]} : vector<8x8xf32> to vector<8x4xf32>
    %111 = vector.extract_strided_slice %51 {offsets = [0, 0], sizes = [8, 4], strides = [1, 1]} : vector<8x8xf32> to vector<8x4xf32>
    %112 = vector.extract_strided_slice %63 {offsets = [0, 0], sizes = [8, 4], strides = [1, 1]} : vector<8x8xf32> to vector<8x4xf32>
    %113 = vector.extract_strided_slice %29 {offsets = [0, 4], sizes = [8, 4], strides = [1, 1]} : vector<8x8xf32> to vector<8x4xf32>
    %114 = vector.extract_strided_slice %40 {offsets = [0, 4], sizes = [8, 4], strides = [1, 1]} : vector<8x8xf32> to vector<8x4xf32>
    %115 = vector.extract_strided_slice %51 {offsets = [0, 4], sizes = [8, 4], strides = [1, 1]} : vector<8x8xf32> to vector<8x4xf32>
    %116 = vector.extract_strided_slice %63 {offsets = [0, 4], sizes = [8, 4], strides = [1, 1]} : vector<8x8xf32> to vector<8x4xf32>
    %117 = tpu.concatenate %109, %110, %111, %112, %113, %114, %115, %116 in 1 : vector<8x4xf32>, vector<8x4xf32>, vector<8x4xf32>, vector<8x4xf32>, vector<8x4xf32>, vector<8x4xf32>, vector<8x4xf32>, vector<8x4xf32> -> vector<8x32xf32>
    %c0_12 = arith.constant 0 : index
    %c0_13 = arith.constant 0 : index
    %c0_14 = arith.constant 0 : index
    %118 = vector.load %arg7[%c0_12, %c0_13, %c0_14] : memref<1x8x32xf32, #tpu.memory_space<vmem>>, vector<1x8x32xf32>
    %119 = vector.shape_cast %118 : vector<1x8x32xf32> to vector<8x32xf32>
    %120 = vector.shape_cast %117 : vector<8x32xf32> to vector<1x8x32xf32>
    tpu.vector_store %arg7[%c0_12, %c0_13, %c0_14], %120 {strides = array<i32>} : memref<1x8x32xf32, #tpu.memory_space<vmem>>, vector<1x8x32xf32>,
    %121 = vector.extract_strided_slice %78 {offsets = [0, 0], sizes = [8, 4], strides = [1, 1]} : vector<8x16xf32> to vector<8x4xf32>
    %122 = vector.extract_strided_slice %93 {offsets = [0, 0], sizes = [8, 4], strides = [1, 1]} : vector<8x16xf32> to vector<8x4xf32>
    %123 = vector.extract_strided_slice %108 {offsets = [0, 0], sizes = [8, 4], strides = [1, 1]} : vector<8x16xf32> to vector<8x4xf32>
    %124 = vector.extract_strided_slice %18 {offsets = [0, 0], sizes = [8, 4], strides = [1, 1]} : vector<8x16xf32> to vector<8x4xf32>
    %125 = vector.extract_strided_slice %78 {offsets = [0, 4], sizes = [8, 4], strides = [1, 1]} : vector<8x16xf32> to vector<8x4xf32>
    %126 = vector.extract_strided_slice %93 {offsets = [0, 4], sizes = [8, 4], strides = [1, 1]} : vector<8x16xf32> to vector<8x4xf32>
    %127 = vector.extract_strided_slice %108 {offsets = [0, 4], sizes = [8, 4], strides = [1, 1]} : vector<8x16xf32> to vector<8x4xf32>
    %128 = vector.extract_strided_slice %18 {offsets = [0, 4], sizes = [8, 4], strides = [1, 1]} : vector<8x16xf32> to vector<8x4xf32>
    %129 = tpu.concatenate %121, %122, %123, %124, %125, %126, %127, %128 in 1 : vector<8x4xf32>, vector<8x4xf32>, vector<8x4xf32>, vector<8x4xf32>, vector<8x4xf32>, vector<8x4xf32>, vector<8x4xf32>, vector<8x4xf32> -> vector<8x32xf32>
    %c0_15 = arith.constant 0 : index
    %c0_16 = arith.constant 0 : index
    %c0_17 = arith.constant 0 : index
    %130 = vector.load %arg8[%c0_15, %c0_16, %c0_17] : memref<1x8x32xf32, #tpu.memory_space<vmem>>, vector<1x8x32xf32>
    %131 = vector.shape_cast %130 : vector<1x8x32xf32> to vector<8x32xf32>
    %132 = vector.shape_cast %129 : vector<8x32xf32> to vector<1x8x32xf32>
    tpu.vector_store %arg8[%c0_15, %c0_16, %c0_17], %132 {strides = array<i32>} : memref<1x8x32xf32, #tpu.memory_space<vmem>>, vector<1x8x32xf32>,
    %133 = vector.extract_strided_slice %78 {offsets = [0, 8], sizes = [8, 4], strides = [1, 1]} : vector<8x16xf32> to vector<8x4xf32>
    %134 = vector.extract_strided_slice %93 {offsets = [0, 8], sizes = [8, 4], strides = [1, 1]} : vector<8x16xf32> to vector<8x4xf32>
    %135 = vector.extract_strided_slice %108 {offsets = [0, 8], sizes = [8, 4], strides = [1, 1]} : vector<8x16xf32> to vector<8x4xf32>
    %136 = vector.extract_strided_slice %18 {offsets = [0, 8], sizes = [8, 4], strides = [1, 1]} : vector<8x16xf32> to vector<8x4xf32>
    %137 = vector.extract_strided_slice %78 {offsets = [0, 12], sizes = [8, 4], strides = [1, 1]} : vector<8x16xf32> to vector<8x4xf32>
    %138 = vector.extract_strided_slice %93 {offsets = [0, 12], sizes = [8, 4], strides = [1, 1]} : vector<8x16xf32> to vector<8x4xf32>
    %139 = vector.extract_strided_slice %108 {offsets = [0, 12], sizes = [8, 4], strides = [1, 1]} : vector<8x16xf32> to vector<8x4xf32>
    %140 = vector.extract_strided_slice %18 {offsets = [0, 12], sizes = [8, 4], strides = [1, 1]} : vector<8x16xf32> to vector<8x4xf32>
    %141 = tpu.concatenate %133, %134, %135, %136, %137, %138, %139, %140 in 1 : vector<8x4xf32>, vector<8x4xf32>, vector<8x4xf32>, vector<8x4xf32>, vector<8x4xf32>, vector<8x4xf32>, vector<8x4xf32>, vector<8x4xf32> -> vector<8x32xf32>
    %c0_18 = arith.constant 0 : index
    %c0_19 = arith.constant 0 : index
    %c0_20 = arith.constant 0 : index
    %142 = vector.load %arg9[%c0_18, %c0_19, %c0_20] : memref<1x8x32xf32, #tpu.memory_space<vmem>>, vector<1x8x32xf32>
    %143 = vector.shape_cast %142 : vector<1x8x32xf32> to vector<8x32xf32>
    %144 = vector.shape_cast %141 : vector<8x32xf32> to vector<1x8x32xf32>
    tpu.vector_store %arg9[%c0_18, %c0_19, %c0_20], %144 {strides = array<i32>} : memref<1x8x32xf32, #tpu.memory_space<vmem>>, vector<1x8x32xf32>,
    return
  }
  func.func @transform_0(%arg0: i32, %arg1: i32) -> (i32, i32, i32) {
    %c0_i32 = arith.constant 0 : i32
    %c0_i32_0 = arith.constant 0 : i32
    return %arg0, %arg1, %c0_i32 : i32, i32, i32
  }
  func.func @transform_1(%arg0: i32, %arg1: i32) -> (i32, i32, i32) {
    %c0_i32 = arith.constant 0 : i32
    %c0_i32_0 = arith.constant 0 : i32
    return %arg0, %arg1, %c0_i32 : i32, i32, i32
  }
  func.func @transform_2(%arg0: i32, %arg1: i32) -> (i32, i32, i32) {
    %c0_i32 = arith.constant 0 : i32
    %c0_i32_0 = arith.constant 0 : i32
    return %arg0, %arg1, %c0_i32 : i32, i32, i32
  }
  func.func @transform_3(%arg0: i32, %arg1: i32) -> (i32, i32) {
    %c0_i32 = arith.constant 0 : i32
    %c0_i32_0 = arith.constant 0 : i32
    %c0_i32_1 = arith.constant 0 : i32
    return %c0_i32, %c0_i32_0 : i32, i32
  }
  func.func @transform_4(%arg0: i32, %arg1: i32) -> (i32, i32) {
    %c0_i32 = arith.constant 0 : i32
    %c0_i32_0 = arith.constant 0 : i32
    %c0_i32_1 = arith.constant 0 : i32
    return %c0_i32, %c0_i32_0 : i32, i32
  }
  func.func @transform_5(%arg0: i32, %arg1: i32) -> (i32, i32, i32) {
    %c0_i32 = arith.constant 0 : i32
    %c0_i32_0 = arith.constant 0 : i32
    return %arg0, %arg1, %c0_i32 : i32, i32, i32
  }
  func.func @transform_6(%arg0: i32, %arg1: i32) -> (i32, i32, i32) {
    %c0_i32 = arith.constant 0 : i32
    %c0_i32_0 = arith.constant 0 : i32
    return %arg0, %arg1, %c0_i32 : i32, i32, i32
  }
  func.func @transform_7(%arg0: i32, %arg1: i32) -> (i32, i32, i32) {
    %c0_i32 = arith.constant 0 : i32
    %c0_i32_0 = arith.constant 0 : i32
    return %arg0, %arg1, %c0_i32 : i32, i32, i32
  }
}

</mosaic_0001>

<bundles_post_ra>
// kernel: tpu_custom_call.1
= control target key start
LH: loop header
LB: loop body
LE: loop exit
PB: predicated region body
PF: predicated region fallthrough
CT: control target
= control target key end

     0   :  { %s1920_s0 = inlined_call_operand.hbm [shape: f32[2,8,32], index: 0, kind: input, shape index: {}]   ;;  %s1921_s1 = inlined_call_operand.hbm [shape: f32[2,8,16], index: 1, kind: input, shape index: {}]   ;;  %s1922_s2 = inlined_call_operand.hbm [shape: f32[2,8,16], index: 2, kind: input, shape index: {}]   ;;  %s1923_s3 = inlined_call_operand.hbm [shape: f32[32,96], index: 3, kind: input, shape index: {}]   ;;  %s1924_s4 = inlined_call_operand.vmem [shape: f32[1,96], index: 4, kind: input, shape index: {}]   ;;  %s1925_s5 = inlined_call_operand.hbm [shape: f32[2,8,32], index: 5, kind: output, shape index: {0}]   ;;  %s1926_s6 = inlined_call_operand.hbm [shape: f32[2,8,32], index: 6, kind: output, shape index: {1}]   ;;  %s1927_s7 = inlined_call_operand.hbm [shape: f32[2,8,32], index: 7, kind: output, shape index: {2}]  }
   0x1   :  { %1937 = sst [smem:[#allocation25_spill]] %s1921_s1 }
   0x2   :  { %1938 = sst [smem:[#allocation26_spill]] %s1923_s3 }
   0x3   :  { %1939 = sst [smem:[#allocation27_spill]] %s1927_s7 }
   0x4   :  { %13 = vsyncpa [#allocation3], 0 }
   0x5   :  { %15 = vsyncpa [#allocation3 + $0x1], 0 }
   0x6   :  { %16 = vsyncpa [#allocation6], 0 }
   0x7   :  { %18 = vsyncpa [#allocation6 + $0x1], 0 }
   0x8   :  { %19 = vsyncpa [#allocation9], 0 }
   0x9   :  { %20 = vsyncpa [#allocation4], 0 }
   0xa   :  { %22 = vsyncpa [#allocation4 + $0x1], 0 }
   0xb   :  { %23 = vsyncpa [#allocation12], 0 }
   0xc   :  { %25 = vsyncpa [#allocation12 + $0x1], 0  ;;  %s1568_s24 = smov 0   ;;  %s1570_s25 = smov 0  }
   0xd   :  { %s1572_s26 = smov 0   ;;  %s1574_s27 = smov 0  }
   0xe   :  { %s1576_s28 = smov 0   ;;  %s1578_s29 = smov 0  }
   0xf LB: > { %1940 = sst [smem:[#allocation19_spill]] %s1471_s24  ;;  %s1599_s30 = sadd.s32 4294967295, %s1491_s29   ;;  %s1491_s29 = sphi %s1578_s29, %s31_s29   ;;  %s1487_s28 = sphi %s1576_s28, %s1962_s28   ;;  %s1483_s27 = sphi %s1574_s27, %s1961_s27   ;;  %s1479_s26 = sphi %s1572_s26, %s1965_s26   ;;  %s1475_s25 = sphi %s1570_s25, %s1964_s25   ;;  %s1471_s24 = sphi %s1568_s24, %s1963_s24  }
  0x10   : > { %1941 = sst [smem:[#allocation20_spill]] %s1487_s28  ;;  %s1928_s8 = sadd.s32 4294967294, %s1491_s29  }
  0x11   : > { %1942 = sst [smem:[#allocation21_spill]] %s1491_s29  ;;  %s43_s9 = sadd.s32 1, %s1487_s28 }
  0x12   : > { %s52_s10 = sadd.s32 1, %s1479_s26  ;;  %p45_p0 = scmp.ge.s32.totalorder %s43_s9, 2 }
  0x13   : > { %p59_p1 = scmp.ne.s32.totalorder %s1479_s26, %s1475_s25  ;;  %p60_p2 = scmp.eq.s32.totalorder %s1491_s29, 0 }
  0x14   : > { %p65_p3 = scmp.ne.s32.totalorder %s1475_s25, %s1471_s24  ;;  %s1967_s9 = smov (%p45_p0, %s43_s9), 0 }
  0x15   : > { %1943 = sst [smem:[#allocation22_spill]] %s1967_s9  ;;  %p1611_p4 = por %p60_p2, %p59_p1 }
  0x16   : > { %p189_p5 = scmp.eq.s32.totalorder %s1599_s30, 1  ;;  %s47_s12 = ssub.s32 %s1487_s28, %s1967_s9 }
  0x17   : > { %p195_p6 = scmp.eq.s32.totalorder %s1928_s8, 1  ;;  %p50_p7 = scmp.eq.s32.totalorder %s47_s12, 0 }
  0x18   : > { %p1620_p8 = por %p189_p5, %p59_p1  ;;  %p1046_p10 = scmp.ge.s32.totalorder %s1491_s29, 2 }
  0x19   : > { %p1627_p9 = por %p195_p6, %p65_p3  ;;  %p1111_p11 = scmp.lt.s32.totalorder %s1491_s29, 2 }
  0x1a   : > { %s1632_s15 = scalar_select %p50_p7, %s1479_s26, %s52_s10  }
  0x1b   : > { %s1946_s14 = scalar_select %p1627_p9, 1, 0 }
  0x1c   : > { %1948 = sst [smem:[#allocation24_spill]] %s1632_s15  ;;  %s1929_s16 = sand.u32 1, %s1479_s26  }
  0x1d   : > { %1947 = sst [smem:[#allocation23_spill]] %s1946_s14  ;;  %s1638_s17 = sshll.u32 %s1487_s28, 3 }
  0x1e   : > { %s1642_s18 = sshll.u32 %s1929_s16, 3  ;;  %p1646_p12 = pnand %p1111_p11, %p1611_p4 }
  0x1f   : > { %s308_s20 = sand.u32 1, %s1491_s29   ;;  %s1950_s1 = sld [smem:[#allocation25_spill]] }
  0x20   : > { %s312_s10 = scalar_lea.vmem [#allocation5], %s1642_s18  ;;  %s1656_s16 = scalar_lea.sflag [#allocation6], %s308_s20 }
  0x21   : > { %s321_s12 = sshll.u32 %s312_s10, 4  ;;  %p66_p13 = scmp.eq.s32.totalorder %s1599_s30, 0  ;;  %s322_s12 = int_to_ptr.vmem [resolvable:$true] %s321_s12 }
  0x22   : > { %p1044_p0 = scmp.ge.s32.totalorder %s1491_s29, 1  ;;  %p258_p1 = scmp.lt.s32.totalorder %s1491_s29, 3 }
  0x23   : > { %p1669_p2 = por %p66_p13, %p65_p3  ;;  %s1952_s3 = sld [smem:[#allocation26_spill]] }
  0x24   : > { %p1676_p4 = pnand %p1044_p0, %p258_p1  ;;  %s297_s22 = scalar_lea.hbm %s1920_s0, %s1638_s17 }
  0x25   : > { %s317_s23 = scalar_lea.hbm %s1950_s1, %s1638_s17  ;;  %s299_s1 = sshll.u32 %s297_s22, 4  ;;  %s300_s1 = int_to_ptr.hbm [resolvable:$true] %s299_s1 }
  0x26   : > { %s319_s8 = sshll.u32 %s317_s23, 4  ;;  %p1086_p5 = pneg %p1676_p4  ;;  %s320_s8 = int_to_ptr.hbm [resolvable:$true] %s319_s8 }
  0x27   : > { %1096 = dma.hbm_to_vmem [thread:$0]  (!%p1646_p12), %s320_s8, 128, %s322_s12, %s1656_s16  }
  0x28   : > { %s1493_s8 = smov [#allocation8]   ;;  %p1087_p3 = pnand %p1086_p5, %p66_p13 }
  0x29   : > { %s269_s23 = sshll.u32 %s1952_s3, 4  ;;  %s271_s10 = sshll.u32 %s1493_s8, 4  ;;  %s270_s23 = int_to_ptr.hbm [resolvable:$true] %s269_s23  ;;  %s272_s10 = int_to_ptr.vmem [resolvable:$true] %s271_s10 }
  0x2a   : > { %s1494_s3 = smov 128   ;;  %s1495_s9 = smov 8  }
  0x2b   : > { %1089 = dma.hbm_to_vmem [thread:$0]  (!%p1087_p3), %s270_s23, 512, %s272_s10, [#allocation9], %s1494_s3, %s1494_s3, %s1495_s9  }
  0x2c   : > { %s292_s28 = scalar_lea.vmem [#allocation2], %s1642_s18  ;;  %s1954_s29 = sand.u32 1, %s1479_s26  }
  0x2d   : > { %s301_s15 = sshll.u32 %s292_s28, 4  ;;  %s289_s14 = scalar_lea.sflag [#allocation3], %s1954_s29  ;;  %s302_s15 = int_to_ptr.vmem [resolvable:$true] %s301_s15 }
  0x2e   : > { %1093 = dma.hbm_to_vmem [thread:$0]  (!%p1646_p12), %s300_s1, 128, %s302_s15, %s289_s14  }
  0x2f   : > { %s337_s7 = scalar_lea.hbm %s1922_s2, %s1638_s17  ;;  %s332_s12 = scalar_lea.vmem [#allocation7], %s1642_s18 }
  0x30   : > { %s341_s21 = sshll.u32 %s332_s12, 4  ;;  %s339_s22 = sshll.u32 %s337_s7, 4  ;;  %s342_s21 = int_to_ptr.vmem [resolvable:$true] %s341_s21  ;;  %s340_s22 = int_to_ptr.hbm [resolvable:$true] %s339_s22 }
  0x31   : > { %1099 = dma.hbm_to_vmem [thread:$0]  (!%p1646_p12), %s340_s22, 128, %s342_s21, %s1656_s16  }
  0x32   : > { %350 = sbr.rel (%p1676_p4) target bundleno = 540 (0x21c), region = 40  ;;  %s1704_s3 = sand.u32 (!%p1676_p4), 1, %s1475_s25  }
  0x33   : > { %s1707_s1 = sshll.u32 (!%p1676_p4), %s1704_s3, 3  ;;  %s353_s24 = scalar_lea.sflag (!%p1676_p4), [#allocation3], %s1704_s3 }
  0x34   : > { %s356_s28 = scalar_lea.vmem (!%p1676_p4), [#allocation2], %s1707_s1 }
  0x37   : > { %1450 = dma.done.wait (%p1669_p2), %s353_s24, 128  }
  0x38   : > { %1452 = vsyncadd (%p1669_p2), %s353_s24, 4294967168  ;;  %s362_s7 = sand.u32 1, %s1599_s30   ;;  %s366_s9 = scalar_lea.vmem [#allocation5], %s1707_s1 }
  0x39   : > { %s363_s29 = scalar_lea.sflag [#allocation6], %s362_s7 }
  0x3a   : > { %1454 = dma.done.wait (%p1669_p2), %s363_s29, 256  }
  0x3b   : > { %1456 = vsyncadd (%p1669_p2), %s363_s29, 4294967040  ;;  %s376_s14 = scalar_lea.vmem [#allocation7], %s1707_s1 }
  0x3c   : > { %1458 = dma.done.wait (%p66_p13), [#allocation9], 512  }
  0x3d   : > { %1460 = vsyncadd (%p66_p13), [#allocation9], 4294966784  ;;  %v1496_v0 = vmov 1   ;;  %v1497_v1 = vmov 8   ;;  %v1498_v2 = vmov 4   ;;  %v439_v3 = vld [vmem:[#allocation8 + $0x18] sm:$0xff] }
  0x3e   : > { %1199 = vset.pattern.permute.xlu2 %v1496_v0  ;;  %1198 = vset.pattern.permute.xlu1 %v1497_v1  ;;  %v433_v4 = vld [vmem:[%s366_s9] sm:$0xff]  ;;  %v438_v5 = vld [vmem:[#allocation8 + $0x10] sm:$0xff]  ;;  %vm444_vm0 = vcmask 261120   ;;  %v1499_v9 = vmov 2   ;;  %v1500_v10 = vmov 5   ;;  %v1501_v11 = vmov 9  }
  0x3f   : > { %1197 = vset.pattern.permute.xlu0 %v1498_v2  ;;  %460 = vmatpush.msra.mxu0 %v439_v3  ;;  %v437_v6 = vld [vmem:[#allocation8 + $0x8] sm:$0xff]  ;;  %v436_v7 = vld [vmem:[#allocation8] sm:$0xff]  ;;  %v435_v8 = vld [vmem:[%s356_s28] sm:$0xff]  ;;  %v1502_v12 = vmov 3   ;;  %v1503_v13 = vmov 6   ;;  %v1504_v14 = vmov 0  }
  0x40   : > { %495 = vperm.xlu2 %1199, %v433_v4   ;;  %485 = vperm.xlu1 %1198, %v433_v4   ;;  %v434_v15 = vld [vmem:[%s376_s14] sm:$0xff]  ;;  %v1505_v16 = vmov 7   ;;  %v1506_v17 = vmov 11   ;;  %v1507_v18 = vmov 10   ;;  %s1508_s17 = smov 60   ;;  %s1509_s18 = smov 16  }
  0x41   : > { %475 = vperm.xlu0 %1197, %v433_v4   ;;  %461 = vmatpush.msra.mxu0 %v438_v5  ;;  %v1220_v25 = vld [vmem:[%s1924_s4] ss:$0 sm:$0xff]  ;;  %s1510_s19 = smov 120   ;;  %s1511_s11 = smov 112   ;;  %vm702_vm1 = vcmask 31744   ;;  %vm704_vm2 = vcmask 64512  }
  0x42   : > { %s1512_s23 = smov 8   ;;  %s1513_s20 = smov 24   ;;  %vm706_vm3 = vcmask 97280   ;;  %vm708_vm4 = vcmask 130048   ;;  %vm710_vm5 = vcmask 162816   ;;  %vm712_vm6 = vcmask 195584  }
  0x43   : > { %462 = vmatpush.msra.mxu0 %v437_v6  ;;  %s1514_s10 = smov 96   ;;  %s1515_s8 = smov 80   ;;  %vm714_vm7 = vcmask 228352  }
  0x44   : > { %s1516_s12 = smov 52   ;;  %s1517_s21 = smov 4  }
  0x45   : > { %463 = vmatpush.msra.mxu0 %v436_v7  ;;  %s1518_s22 = smov 12   ;;  %s1519_s24 = smov 20  }
  0x46   : > { %1061 = vmatmul.msk.f32.vlgmr.msra.gmra.mxu0 %vm444_vm0, %v435_v8  ;;  %s1520_s28 = smov 116   ;;  %s1521_s29 = smov 88  }
  0x47   : > { %s1522_s9 = smov 104   ;;  %s1523_s14 = smov 100  }
  0x48   : > { %1203 = vset.pattern.permute.xlu2 %v1499_v9  ;;  %1200 = vset.pattern.permute.xlu1 %v1500_v10  ;;  %s1524_s15 = smov 92   ;;  %s1525_s16 = smov 108  }
  0x49   : > { %1201 = vset.pattern.permute.xlu0 %v1501_v11  ;;  %520 = vperm.xlu2 %1203, %v433_v4  }
  0x4a   : > { %500 = vperm.xlu1 %1200, %v433_v4   ;;  %510 = vperm.xlu0 %1201, %v433_v4  }
  0x51   : > { %1205 = vset.pattern.permute.xlu2 %v1502_v12 }
  0x52   : > { %1204 = vset.pattern.permute.xlu1 %v1503_v13  ;;  %1202 = vset.pattern.permute.xlu0 %v1504_v14 }
  0x53   : > { %545 = vperm.xlu2 %1205, %v433_v4   ;;  %525 = vperm.xlu1 %1204, %v433_v4  }
  0x54   : > { %470 = vperm.xlu0 %1202, %v433_v4  }
  0x5b   : > { %1206 = vset.pattern.permute.xlu2 %v1505_v16  ;;  %1207 = vset.pattern.permute.xlu1 %v1506_v17 }
  0x5c   : > { %576 = vperm.xlu0 %1202, %v434_v15   ;;  %555 = vperm.xlu2 %1206, %v433_v4  }
  0x5d   : > { %565 = vperm.xlu1 %1207, %v433_v4  }
  0x64   : > { %1210 = vset.pattern.permute.xlu0 %v1502_v12  ;;  %1212 = vset.pattern.permute.xlu2 %v1500_v10 }
  0x65   : > { %1208 = vset.pattern.permute.xlu1 %v1496_v0  ;;  %601 = vperm.xlu0 %1210, %v434_v15  }
  0x66   : > { %616 = vperm.xlu2 %1212, %v434_v15   ;;  %581 = vperm.xlu1 %1208, %v434_v15  }
  0x6d   : > { %1211 = vset.pattern.permute.xlu0 %v1507_v18 }
  0x6e   : > { %1214 = vset.pattern.permute.xlu2 %v1503_v13  ;;  %1209 = vset.pattern.permute.xlu1 %v1499_v9 }
  0x6f   : > { %535 = vperm.xlu0 %1211, %v433_v4   ;;  %626 = vperm.xlu2 %1214, %v434_v15  }
  0x70   : > { %591 = vperm.xlu1 %1209, %v434_v15  }
  0x77   : > { %661 = vperm.xlu0 %1211, %v434_v15   ;;  %1216 = vset.pattern.permute.xlu2 %v1506_v17 }
  0x78   : > { %1213 = vset.pattern.permute.xlu1 %v1501_v11  ;;  %671 = vperm.xlu2 %1216, %v434_v15  }
  0x79   : > { %651 = vperm.xlu1 %1213, %v434_v15  }
  0x7f   : > { %1219 = vset.pattern.permute.xlu0 %v1506_v17 }
  0x80   : > { %1218 = vset.pattern.permute.xlu2 %v1497_v1 }
  0x81   : > { %1215 = vset.pattern.permute.xlu1 %v1505_v16  ;;  %646 = vperm.xlu2 %1218, %v434_v15  }
  0x82   : > { %636 = vperm.xlu1 %1215, %v434_v15  }
  0x8a   : > { %1217 = vset.pattern.permute.xlu1 %v1498_v2 }
  0x8b   : > { %611 = vperm.xlu1 %1217, %v434_v15  }
  0x9a   : > { %v1735_v19 = vpop.permute.xlu2 %495 }
  0xa3   : > { %v1737_v20 = vpop.permute.xlu2 %520 }
  0xad   : > { %v546_v22 = vpop.permute.xlu2 %545 }
  0xb2   : > { %v486_v23 = vpop.permute.xlu1 %485 }
  0xb3   : > { %v476_v21 = vpop.permute.xlu0 %475 }
  0xb6   : > { %v556_v26 = vpop.permute.xlu2 %555 }
  0xbc   : > { %v511_v24 = vpop.permute.xlu0 %510  ;;  %v501_v27 = vpop.permute.xlu1 %500 }
  0xc0   : > { %v617_v33 = vpop.permute.xlu2 %616 }
  0xc3   : > { %v465_v28 = vpop.f32.mrf.mxu0 }
  0xc4   : > { %v1742_v29 = vadd.f32 %v1220_v25, %v465_v28 }
  0xc5   : > { %v526_v36 = vpop.permute.xlu1 %525 }
  0xc6   : > { %v1744_v30 = vpop.permute.xlu0 %470  ;;  %730 = vrot.lane.b32.xlu2 %v1742_v29, %s1508_s17  ;;  %v558_v31 = vmul.f32 %v556_v26, %v1742_v29  ;;  %v478_v32 = vmul.f32 %v476_v21, %v1742_v29  ;;  %v488_v34 = vmul.f32 %v486_v23, %v1742_v29  ;;  %v619_v35 = vmul.f32 %v617_v33, %v1742_v29  ;;  %s1526_s17 = smov 64  }
  0xc7   : > { %v513_v38 = vmul.f32 %v511_v24, %v1742_v29  ;;  %v503_v39 = vmul.f32 %v501_v27, %v1742_v29  ;;  %v528_v42 = vmul.f32 %v526_v36, %v1742_v29  ;;  %v548_v49 = vmul.f32 %v546_v22, %v1742_v29 }
  0xc8   : > { %560 = vrot.lane.b32.xlu0 %v558_v31, %s1509_s18  ;;  %480 = vrot.lane.b32.xlu1 %v478_v32, %s1510_s19  ;;  %v498_v4 = vmul.f32 %v1735_v19, %v1742_v29  ;;  %v473_v9 = vmul.f32 %v1744_v30, %v1742_v29  ;;  %v523_v13 = vmul.f32 %v1737_v20, %v1742_v29 }
  0xc9   : > { %v627_v55 = vpop.permute.xlu2 %626 }
  0xca   : > { %v629_v57 = vmul.f32 %v627_v55, %v1742_v29 }
  0xce   : > { %v1752_v37 = vpop.permute.xlu0 %576  ;;  %490 = vrot.lane.b32.xlu2 %v488_v34, %s1511_s11 }
  0xcf   : > { %v566_v40 = vpop.permute.xlu1 %565  ;;  %v579_v23 = vmul.f32 %v1752_v37, %v1742_v29 }
  0xd0   : > { %621 = vrot.lane.b32.xlu0 %v619_v35, %s1511_s11  ;;  %515 = vrot.lane.b32.xlu1 %v513_v38, %s1511_s11  ;;  %v568_v46 = vmul.f32 %v566_v40, %v1742_v29 }
  0xd2   : > { %v672_v59 = vpop.permute.xlu2 %671 }
  0xd3   : > { %v674_v61 = vmul.f32 %v672_v59, %v1742_v29 }
  0xd6   : > { %505 = vrot.lane.b32.xlu2 %v503_v39, %s1510_s19 }
  0xd7   : > { %v602_v41 = vpop.permute.xlu0 %601 }
  0xd8   : > { %v582_v43 = vpop.permute.xlu1 %581  ;;  %v604_v52 = vmul.f32 %v602_v41, %v1742_v29 }
  0xd9   : > { %v584_v51 = vmul.f32 %v582_v43, %v1742_v29 }
  0xdb   : > { %v647_v62 = vpop.permute.xlu2 %646 }
  0xdc   : > { %v649_v32 = vmul.f32 %v647_v62, %v1742_v29 }
  0xde   : > { %530 = vrot.lane.b32.xlu2 %v528_v42, %s1510_s19  ;;  %s1808_s19 = sshll.u32 %s1483_s27, 3 }
  0xe1   : > { %v536_v44 = vpop.permute.xlu0 %535 }
  0xe2   : > { %v538_v45 = vmul.f32 %v536_v44, %v1742_v29  ;;  %v592_v50 = vpop.permute.xlu1 %591 }
  0xe3   : > { %v594_v53 = vmul.f32 %v592_v50, %v1742_v29 }
  0xe4   : > { %540 = vrot.lane.b32.xlu1 %v538_v45, %s1511_s11 }
  0xe6   : > { %570 = vrot.lane.b32.xlu2 %v568_v46, %s1512_s23 }
  0xe9   : > { %v662_v47 = vpop.permute.xlu0 %661 }
  0xea   : > { %v664_v48 = vmul.f32 %v662_v47, %v1742_v29 }
  0xeb   : > { %v652_v54 = vpop.permute.xlu1 %651 }
  0xec   : > { %550 = vrot.lane.b32.xlu1 %v548_v49, %s1513_s20  ;;  %666 = vrot.lane.b32.xlu0 %v664_v48, %s1514_s10  ;;  %v654_v56 = vmul.f32 %v652_v54, %v1742_v29  ;;  %s807_s20 = scalar_lea.hbm %s1925_s5, %s1808_s19 }
  0xed   : > { %s811_s27 = sshll.u32 %s807_s20, 4  ;;  %s812_s27 = int_to_ptr.hbm [resolvable:$true] %s811_s27 }
  0xee   : > { %586 = vrot.lane.b32.xlu2 %v584_v51, %s1511_s11 }
  0xf4   : > { %606 = vrot.lane.b32.xlu1 %v604_v52, %s1515_s8  ;;  %v637_v58 = vpop.permute.xlu1 %636 }
  0xf5   : > { %v639_v60 = vmul.f32 %v637_v58, %v1742_v29 }
  0xf6   : > { %596 = vrot.lane.b32.xlu2 %v594_v53, %s1514_s10 }
  0xfc   : > { %656 = vrot.lane.b32.xlu1 %v654_v56, %s1511_s11 }
  0xfd   : > { %v612_v1 = vpop.permute.xlu1 %611 }
  0xfe   : > { %631 = vrot.lane.b32.xlu2 %v629_v57, %s1514_s10  ;;  %v614_v36 = vmul.f32 %v612_v1, %v1742_v29 }
 0x104   : > { %641 = vrot.lane.b32.xlu1 %v639_v60, %s1515_s8 }
 0x106   : > { %676 = vrot.lane.b32.xlu2 %v674_v61, %s1515_s8 }
 0x10e   : > { %762 = vrot.lane.b32.xlu2 %v1742_v29, %s1516_s12  ;;  %s786_s12 = scalar_lea.sflag [#allocation4], %s1704_s3 }
 0x120   : > { %v1779_v63 = vpop.permute.xlu2 %730 }
 0x128   : > { %v491_v0 = vpop.permute.xlu2 %490 }
 0x130   : > { %v506_v2 = vpop.permute.xlu2 %505 }
 0x131   : > { %v508_v6 = vadd.f32 %v506_v2, %v498_v4 }
 0x138   : > { %v531_v5 = vpop.permute.xlu2 %530 }
 0x139   : > { %v533_v15 = vadd.f32 %v531_v5, %v523_v13 }
 0x13a   : > { %v481_v3 = vpop.permute.xlu1 %480  ;;  %v561_v18 = vpop.permute.xlu0 %560 }
 0x13b   : > { %v483_v10 = vadd.f32 %v481_v3, %v473_v9 }
 0x13d   : > { %v1785_v12 = vadd.f32 %v491_v0, %v483_v10 }
 0x140   : > { %v571_v11 = vpop.permute.xlu2 %570 }
 0x142   : > { %v516_v7 = vpop.permute.xlu1 %515  ;;  %v622_v30 = vpop.permute.xlu0 %621 }
 0x143   : > { %v518_v8 = vadd.f32 %v516_v7, %v508_v6  ;;  %v624_v39 = vadd.f32 %v622_v30, %v614_v36 }
 0x145   : > { %681 = vrot.lane.b32.xlu0 %v518_v8, %s1517_s21  ;;  %s1355_s21 = sshra.s32 %s812_s27, 4  ;;  %s1356_s21 = int_to_ptr.hbm [resolvable:$true] %s1355_s21 }
 0x146   : > { %p1362_p12 = scmp.lt.s32.totalorder %s1356_s21, %s1925_s5 }
 0x148   : > { %v587_v14 = vpop.permute.xlu2 %586 }
 0x149   : > { %v589_v20 = vadd.f32 %v587_v14, %v579_v23 }
 0x14d   : > { %693 = vrot.lane.b32.xlu0 %v1785_v12, %s1518_s22  ;;  %s1357_s22 = scalar_lea.hbm %s1356_s21, 8 }
 0x14e   : > { %p1358_p6 = scmp.ne.s32.totalorder %s1356_s21, %s1357_s22 }
 0x150   : > { %v597_v19 = vpop.permute.xlu2 %596  ;;  %p1359_p7 = pnand %p1358_p6, %p1620_p8 }
 0x151   : > { %v599_v26 = vadd.f32 %v597_v19, %v589_v20 }
 0x152   : > { %p1360_p11 = pneg %p1359_p7 }
 0x156   : > { %v541_v16 = vpop.permute.xlu1 %540 }
 0x157   : > { %v543_v17 = vadd.f32 %v541_v16, %v533_v15 }
 0x158   : > { %v632_v31 = vpop.permute.xlu2 %631 }
 0x159   : > { %699 = vrot.lane.b32.xlu2 %v543_v17, %s1519_s24  ;;  %685 = vrot.lane.b32.xlu1 %v543_v17, %s1512_s23  ;;  %v634_v41 = vadd.f32 %v632_v31, %v624_v39 }
 0x15e   : > { %v551_v21 = vpop.permute.xlu1 %550  ;;  %v667_v35 = vpop.permute.xlu0 %666 }
 0x15f   : > { %v553_v22 = vadd.f32 %v551_v21, %v1742_v29 }
 0x160   : > { %v677_v38 = vpop.permute.xlu2 %676 }
 0x161   : > { %v563_v24 = vadd.f32 %v561_v18, %v553_v22  ;;  %696 = vrot.lane.b32.xlu1 %v518_v8, %s1509_s18  ;;  %s1527_s18 = smov 72  }
 0x163   : > { %v1795_v25 = vadd.f32 %v571_v11, %v563_v24 }
 0x165   : > { %689 = vrot.lane.b32.xlu2 %v1795_v25, %s1520_s28 }
 0x166   : > { %v607_v27 = vpop.permute.xlu1 %606 }
 0x167   : > { %v609_v28 = vadd.f32 %v607_v27, %v599_v26 }
 0x168   : > { %v763_v44 = vpop.permute.xlu2 %762 }
 0x169   : > { %718 = vrot.lane.b32.xlu0 %v609_v28, %s1514_s10 }
 0x16e   : > { %v657_v33 = vpop.permute.xlu1 %656 }
 0x16f   : > { %v659_v34 = vadd.f32 %v657_v33, %v649_v32 }
 0x171   : > { %v669_v37 = vadd.f32 %v667_v35, %v659_v34  ;;  %753 = vrot.lane.b32.xlu0 %v609_v28, %s1521_s29  ;;  %s1361_s29 = scalar_lea.hbm %s1925_s5, 16 }
 0x172   : > { %p1363_p13 = scmp.lt.s32.totalorder %s1361_s29, %s1357_s22 }
 0x173   : > { %v679_v40 = vadd.f32 %v677_v38, %v669_v37 }
 0x174   : > { %p1364_p0 = por %p1363_p13, %p1362_p12 }
 0x175   : > { %726 = vrot.lane.b32.xlu2 %v679_v40, %s1522_s9 }
 0x176   : > { %v642_v42 = vpop.permute.xlu1 %641  ;;  %p1365_p1 = pnand %p1364_p0, %p1360_p11 }
 0x177   : > { %v644_v43 = vadd.f32 %v642_v42, %v634_v41 }
 0x179   : > { %722 = vrot.lane.b32.xlu1 %v644_v43, %s1523_s14  ;;  %759 = vrot.lane.b32.xlu0 %v679_v40, %s1514_s10  ;;  %s418_s10 = scalar_lea.vmem [#allocation10], %s1707_s1 }
 0x17a   : > { %s809_s8 = sshll.u32 %s418_s10, 4  ;;  %s810_s8 = int_to_ptr.vmem [resolvable:$true] %s809_s8 }
 0x17d   : > { %739 = vrot.lane.b32.xlu2 %v679_v40, %s1520_s28 }
 0x181   : > { %756 = vrot.lane.b32.xlu1 %v644_v43, %s1524_s15  ;;  %736 = vrot.lane.b32.xlu0 %v644_v43, %s1511_s11 }
 0x185   : > { %771 = vrot.lane.b32.xlu2 %v679_v40, %s1525_s16 }
 0x189   : > { %733 = vrot.lane.b32.xlu1 %v609_v28, %s1525_s16  ;;  %768 = vrot.lane.b32.xlu0 %v644_v43, %s1522_s9 }
 0x191   : > { %765 = vrot.lane.b32.xlu1 %v609_v28, %s1523_s14  ;;  %774 = vrot.lane.b32.xlu0 %v1742_v29, %s1526_s17 }
 0x199   : > { %742 = vrot.lane.b32.xlu1 %v1742_v29, %s1527_s18 }
 0x1b3   : > { %v700_v45 = vpop.permute.xlu2 %699 }
 0x1b7   : > { %v682_v46 = vpop.permute.xlu0 %681 }
 0x1b8   : > { %v703_v48 = vsel %vm702_vm1, %v1785_v12, %v682_v46 }
 0x1bf   : > { %v690_v50 = vpop.permute.xlu2 %689  ;;  %v694_v51 = vpop.permute.xlu0 %693 }
 0x1cb   : > { %v686_v47 = vpop.permute.xlu1 %685 }
 0x1cc   : > { %v705_v49 = vsel %vm704_vm2, %v703_v48, %v686_v47 }
 0x1cd   : > { %v707_v29 = vsel %vm706_vm3, %v705_v49, %v690_v50 }
 0x1ce   : > { %v709_v53 = vsel %vm708_vm4, %v707_v29, %v694_v51 }
 0x1d3   : > { %v697_v52 = vpop.permute.xlu1 %696 }
 0x1d4   : > { %v711_v54 = vsel %vm710_vm5, %v709_v53, %v697_v52 }
 0x1d5   : > { %v713_v55 = vsel %vm712_vm6, %v711_v54, %v700_v45 }
 0x1d6   : > { %v715_v56 = vsel %vm714_vm7, %v713_v55, %v1795_v25 }
 0x1d7   : > { %716 = vst.msk [vmem:[%s418_s10] sm:$0xff] %vm444_vm0, %v715_v56 }
 0x1d8   : > { %1368 = shalt.err (!%p1365_p1)
}
 0x1d9   : > { %1080 = dma.vmem_to_hbm [thread:$0]  (%p1620_p8), %s810_s8, 128, %s812_s27, %s786_s12   ;;  %v727_v61 = vpop.permute.xlu2 %726 }
 0x1da   : > { %s822_s16 = scalar_lea.hbm %s1926_s6, %s1808_s19  ;;  %s1955_s11 = sld [smem:[#allocation27_spill]] }
 0x1db   : > { %v719_v57 = vpop.permute.xlu0 %718  ;;  %s432_s20 = scalar_lea.vmem [#allocation13], %s1707_s1  ;;  %s425_s10 = scalar_lea.vmem [#allocation11], %s1707_s1 }
 0x1dc   : > { %s824_s8 = sshll.u32 %s425_s10, 4  ;;  %s826_s27 = sshll.u32 %s822_s16, 4  ;;  %s825_s8 = int_to_ptr.vmem [resolvable:$true] %s824_s8  ;;  %s827_s27 = int_to_ptr.hbm [resolvable:$true] %s826_s27 }
 0x1dd   : > { %s1858_s12 = sshll.u32 %s432_s20, 4  ;;  %s791_s1 = scalar_lea.sflag [#allocation12], %s362_s7  ;;  %s840_s12 = int_to_ptr.vmem [resolvable:$true] %s1858_s12 }
 0x1de   : > { %s1389_s29 = scalar_lea.hbm %s1926_s6, 16 }
 0x1e0   : > { %s837_s23 = scalar_lea.hbm %s1955_s11, %s1808_s19  ;;  %s1383_s19 = sshra.s32 %s827_s27, 4  ;;  %s1384_s19 = int_to_ptr.hbm [resolvable:$true] %s1383_s19 }
 0x1e1   : > { %v740_v1 = vpop.permute.xlu2 %739  ;;  %s1860_s21 = sshll.u32 %s837_s23, 4  ;;  %s1385_s22 = scalar_lea.hbm %s1384_s19, 8  ;;  %s842_s21 = int_to_ptr.hbm [resolvable:$true] %s1860_s21 }
 0x1e2   : > { %p1386_p2 = scmp.ne.s32.totalorder %s1384_s19, %s1385_s22  ;;  %p1390_p3 = scmp.lt.s32.totalorder %s1384_s19, %s1926_s6 }
 0x1e3   : > { %v754_v58 = vpop.permute.xlu0 %753  ;;  %p1391_p6 = scmp.lt.s32.totalorder %s1389_s29, %s1385_s22 }
 0x1e4   : > { %p1387_p4 = pnand %p1386_p2, %p1620_p8 }
 0x1e5   : > { %p1392_p7 = por %p1391_p6, %p1390_p3 }
 0x1e6   : > { %p1388_p5 = pneg %p1387_p4 }
 0x1e8   : > { %p1393_p11 = pnand %p1392_p7, %p1388_p5 }
 0x1e9   : > { %v772_v12 = vpop.permute.xlu2 %771 }
 0x1eb   : > { %v723_v59 = vpop.permute.xlu1 %722  ;;  %v760_v60 = vpop.permute.xlu0 %759 }
 0x1ec   : > { %v745_v5 = vsel %vm702_vm1, %v719_v57, %v723_v59 }
 0x1ed   : > { %v746_v7 = vsel %vm704_vm2, %v745_v5, %v727_v61 }
 0x1ee   : > { %v747_v10 = vsel %vm706_vm3, %v746_v7, %v1779_v63 }
 0x1f3   : > { %v757_v62 = vpop.permute.xlu1 %756  ;;  %v737_v0 = vpop.permute.xlu0 %736 }
 0x1f4   : > { %v777_v4 = vsel %vm702_vm1, %v754_v58, %v757_v62 }
 0x1f5   : > { %v778_v6 = vsel %vm704_vm2, %v777_v4, %v760_v60 }
 0x1f6   : > { %v779_v9 = vsel %vm706_vm3, %v778_v6, %v763_v44 }
 0x1fb   : > { %v734_v2 = vpop.permute.xlu1 %733  ;;  %v769_v3 = vpop.permute.xlu0 %768 }
 0x1fc   : > { %v748_v13 = vsel %vm708_vm4, %v747_v10, %v734_v2 }
 0x1fd   : > { %v749_v17 = vsel %vm710_vm5, %v748_v13, %v737_v0 }
 0x1fe   : > { %v750_v19 = vsel %vm712_vm6, %v749_v17, %v740_v1 }
 0x203   : > { %v766_v8 = vpop.permute.xlu1 %765  ;;  %v775_v16 = vpop.permute.xlu0 %774 }
 0x204   : > { %v780_v11 = vsel %vm708_vm4, %v779_v9, %v766_v8 }
 0x205   : > { %v781_v14 = vsel %vm710_vm5, %v780_v11, %v769_v3 }
 0x206   : > { %v782_v15 = vsel %vm712_vm6, %v781_v14, %v772_v12 }
 0x207   : > { %v783_v63 = vsel %vm714_vm7, %v782_v15, %v775_v16 }
 0x208   : > { %784 = vst.msk [vmem:[%s432_s20] sm:$0xff] %vm444_vm0, %v783_v63 }
 0x20b   : > { %v743_v18 = vpop.permute.xlu1 %742 }
 0x20c   : > { %v751_v21 = vsel %vm714_vm7, %v750_v19, %v743_v18 }
 0x20d   : > { %752 = vst.msk [vmem:[%s425_s10] sm:$0xff] %vm444_vm0, %v751_v21 }
 0x20e   : > { %1396 = shalt.err (!%p1393_p11)
}
 0x20f   : > { %1081 = dma.vmem_to_hbm [thread:$0]  (%p1620_p8), %s825_s8, 128, %s827_s27, %s791_s1  }
 0x210   : > { %s1411_s30 = sshra.s32 %s842_s21, 4  ;;  %s1417_s16 = scalar_lea.hbm %s1955_s11, 16  ;;  %s1412_s30 = int_to_ptr.hbm [resolvable:$true] %s1411_s30 }
 0x211   : > { %s1413_s7 = scalar_lea.hbm %s1412_s30, 8  ;;  %p1418_p1 = scmp.lt.s32.totalorder %s1412_s30, %s1955_s11 }
 0x212   : > { %p1414_p12 = scmp.ne.s32.totalorder %s1412_s30, %s1413_s7  ;;  %p1419_p2 = scmp.lt.s32.totalorder %s1417_s16, %s1413_s7 }
 0x214   : > { %p1415_p13 = pnand %p1414_p12, %p1620_p8  ;;  %p1420_p4 = por %p1419_p2, %p1418_p1 }
 0x216   : > { %p1416_p0 = pneg %p1415_p13 }
 0x218   : > { %p1421_p5 = pnand %p1420_p4, %p1416_p0 }
 0x21a   : > { %1424 = shalt.err (!%p1421_p5)
}
 0x21b   : > { %1082 = dma.vmem_to_hbm [thread:$0]  (%p1620_p8), %s840_s12, 128, %s842_s21, %s791_s1  }
 0x21c PF: > { %s1956_s23 = sld [smem:[#allocation19_spill]]  ;;  %p1101_p3 = pnand %p1046_p10, %p1627_p9 }
 0x21d   : > { %s1958_s10 = sld [smem:[#allocation21_spill]] }
 0x21e   : > { %p1102_p6 = pneg %p1101_p3 }
 0x222   : > { %s853_s8 = sand.u32 1, %s1956_s23  }
 0x223   : > { %s854_s27 = scalar_lea.sflag [#allocation4], %s853_s8 }
 0x224   : > { %1462 = dma.done.wait (%p1102_p6), %s854_s27, 128  }
 0x225   : > { %1464 = vsyncadd (%p1102_p6), %s854_s27, 4294967168  ;;  %s1959_s19 = sadd.s32 4294967294, %s1958_s10  }
 0x226   : > { %s863_s13 = sand.u32 1, %s1959_s19  }
 0x227   : > { %s864_s22 = scalar_lea.sflag [#allocation12], %s863_s13 }
 0x228   : > { %1466 = dma.done.wait (%p1102_p6), %s864_s22, 256  }
 0x229   : > { %1468 = vsyncadd (%p1102_p6), %s864_s22, 4294967040  ;;  %s31_s29 = sadd.s32 1, %s1958_s10   ;;  %s1960_s12 = sld [smem:[#allocation24_spill]] }
 0x22a   : > { %p28_p8 = scmp.ge.s32.totalorder %s31_s29, 4   ;;  %s1961_s27 = sld [smem:[#allocation20_spill]] }
 0x22b   : > { %s1962_s28 = sld [smem:[#allocation22_spill]]  ;;  %s1963_s24 = smov %s1475_s25 }
 0x22c   : > { %s1964_s25 = smov %s1479_s26  ;;  %30 = sbr.rel (!%p28_p8) target bundleno = 15 (0xf), region = 145 }
 0x22f   : > { %s1965_s26 = smov %s1960_s12 }
 0x231   :  { %880 = vsyncpa [#allocation3], 1 }
 0x232   :  { %882 = vsyncpa [#allocation3 + $0x1], 1 }
 0x233   :  { %883 = vsyncpa [#allocation6], 1 }
 0x234   :  { %885 = vsyncpa [#allocation6 + $0x1], 1 }
 0x235   :  { %886 = vsyncpa [#allocation9], 1 }
 0x236   :  { %887 = vsyncpa [#allocation4], 1 }
 0x237   :  { %889 = vsyncpa [#allocation4 + $0x1], 1 }
 0x238   :  { %890 = vsyncpa [#allocation12], 1 }
 0x239   :  { %892 = vsyncpa [#allocation12 + $0x1], 1 }

// kernel: tpu_custom_call.1
= control target key start
LH: loop header
LB: loop body
LE: loop exit
PB: predicated region body
PF: predicated region fallthrough
CT: control target
= control target key end

     0   :  { %s1920_s0 = inlined_call_operand.hbm [shape: f32[2,8,32], index: 0, kind: input, shape index: {}]   ;;  %s1921_s1 = inlined_call_operand.hbm [shape: f32[2,8,16], index: 1, kind: input, shape index: {}]   ;;  %s1922_s2 = inlined_call_operand.hbm [shape: f32[2,8,16], index: 2, kind: input, shape index: {}]   ;;  %s1923_s3 = inlined_call_operand.hbm [shape: f32[32,96], index: 3, kind: input, shape index: {}]   ;;  %s1924_s4 = inlined_call_operand.vmem [shape: f32[1,96], index: 4, kind: input, shape index: {}]   ;;  %s1925_s5 = inlined_call_operand.hbm [shape: f32[2,8,32], index: 5, kind: output, shape index: {0}]   ;;  %s1926_s6 = inlined_call_operand.hbm [shape: f32[2,8,32], index: 6, kind: output, shape index: {1}]   ;;  %s1927_s7 = inlined_call_operand.hbm [shape: f32[2,8,32], index: 7, kind: output, shape index: {2}]  }
   0x1   :  { %1937 = sst [smem:[#allocation25_spill]] %s1921_s1 }
   0x2   :  { %1938 = sst [smem:[#allocation26_spill]] %s1923_s3 }
   0x3   :  { %1939 = sst [smem:[#allocation27_spill]] %s1927_s7 }
   0x4   :  { %13 = vsyncpa [#allocation3], 0 }
   0x5   :  { %15 = vsyncpa [#allocation3 + $0x1], 0 }
   0x6   :  { %16 = vsyncpa [#allocation6], 0 }
   0x7   :  { %18 = vsyncpa [#allocation6 + $0x1], 0 }
   0x8   :  { %19 = vsyncpa [#allocation9], 0 }
   0x9   :  { %20 = vsyncpa [#allocation4], 0 }
   0xa   :  { %22 = vsyncpa [#allocation4 + $0x1], 0 }
   0xb   :  { %23 = vsyncpa [#allocation12], 0 }
   0xc   :  { %25 = vsyncpa [#allocation12 + $0x1], 0  ;;  %s1568_s24 = smov 0   ;;  %s1570_s25 = smov 0  }
   0xd   :  { %s1572_s26 = smov 0   ;;  %s1574_s27 = smov 0  }
   0xe   :  { %s1576_s28 = smov 0   ;;  %s1578_s29 = smov 0  }
   0xf LB: > { %1940 = sst [smem:[#allocation19_spill]] %s1471_s24  ;;  %s1599_s30 = sadd.s32 4294967295, %s1491_s29   ;;  %s1491_s29 = sphi %s1578_s29, %s31_s29   ;;  %s1487_s28 = sphi %s1576_s28, %s1962_s28   ;;  %s1483_s27 = sphi %s1574_s27, %s1961_s27   ;;  %s1479_s26 = sphi %s1572_s26, %s1965_s26   ;;  %s1475_s25 = sphi %s1570_s25, %s1964_s25   ;;  %s1471_s24 = sphi %s1568_s24, %s1963_s24  }
  0x10   : > { %1941 = sst [smem:[#allocation20_spill]] %s1487_s28  ;;  %s1928_s8 = sadd.s32 4294967294, %s1491_s29  }
  0x11   : > { %1942 = sst [smem:[#allocation21_spill]] %s1491_s29  ;;  %s43_s9 = sadd.s32 1, %s1487_s28 }
  0x12   : > { %s52_s10 = sadd.s32 1, %s1479_s26  ;;  %p45_p0 = scmp.ge.s32.totalorder %s43_s9, 2 }
  0x13   : > { %p59_p1 = scmp.ne.s32.totalorder %s1479_s26, %s1475_s25  ;;  %p60_p2 = scmp.eq.s32.totalorder %s1491_s29, 0 }
  0x14   : > { %p65_p3 = scmp.ne.s32.totalorder %s1475_s25, %s1471_s24  ;;  %s1967_s9 = smov (%p45_p0, %s43_s9), 0 }
  0x15   : > { %1943 = sst [smem:[#allocation22_spill]] %s1967_s9  ;;  %p1611_p4 = por %p60_p2, %p59_p1 }
  0x16   : > { %p189_p5 = scmp.eq.s32.totalorder %s1599_s30, 1  ;;  %s47_s12 = ssub.s32 %s1487_s28, %s1967_s9 }
  0x17   : > { %p195_p6 = scmp.eq.s32.totalorder %s1928_s8, 1  ;;  %p50_p7 = scmp.eq.s32.totalorder %s47_s12, 0 }
  0x18   : > { %p1620_p8 = por %p189_p5, %p59_p1  ;;  %p1046_p10 = scmp.ge.s32.totalorder %s1491_s29, 2 }
  0x19   : > { %p1627_p9 = por %p195_p6, %p65_p3  ;;  %p1111_p11 = scmp.lt.s32.totalorder %s1491_s29, 2 }
  0x1a   : > { %s1632_s15 = scalar_select %p50_p7, %s1479_s26, %s52_s10  }
  0x1b   : > { %s1946_s14 = scalar_select %p1627_p9, 1, 0 }
  0x1c   : > { %1948 = sst [smem:[#allocation24_spill]] %s1632_s15  ;;  %s1929_s16 = sand.u32 1, %s1479_s26  }
  0x1d   : > { %1947 = sst [smem:[#allocation23_spill]] %s1946_s14  ;;  %s1638_s17 = sshll.u32 %s1487_s28, 3 }
  0x1e   : > { %s1642_s18 = sshll.u32 %s1929_s16, 3  ;;  %p1646_p12 = pnand %p1111_p11, %p1611_p4 }
  0x1f   : > { %s308_s20 = sand.u32 1, %s1491_s29   ;;  %s1950_s1 = sld [smem:[#allocation25_spill]] }
  0x20   : > { %s312_s10 = scalar_lea.vmem [#allocation5], %s1642_s18  ;;  %s1656_s16 = scalar_lea.sflag [#allocation6], %s308_s20 }
  0x21   : > { %s321_s12 = sshll.u32 %s312_s10, 4  ;;  %p66_p13 = scmp.eq.s32.totalorder %s1599_s30, 0  ;;  %s322_s12 = int_to_ptr.vmem [resolvable:$true] %s321_s12 }
  0x22   : > { %p1044_p0 = scmp.ge.s32.totalorder %s1491_s29, 1  ;;  %p258_p1 = scmp.lt.s32.totalorder %s1491_s29, 3 }
  0x23   : > { %p1669_p2 = por %p66_p13, %p65_p3  ;;  %s1952_s3 = sld [smem:[#allocation26_spill]] }
  0x24   : > { %p1676_p4 = pnand %p1044_p0, %p258_p1  ;;  %s297_s22 = scalar_lea.hbm %s1920_s0, %s1638_s17 }
  0x25   : > { %s317_s23 = scalar_lea.hbm %s1950_s1, %s1638_s17  ;;  %s299_s1 = sshll.u32 %s297_s22, 4  ;;  %s300_s1 = int_to_ptr.hbm [resolvable:$true] %s299_s1 }
  0x26   : > { %s319_s8 = sshll.u32 %s317_s23, 4  ;;  %p1086_p5 = pneg %p1676_p4  ;;  %s320_s8 = int_to_ptr.hbm [resolvable:$true] %s319_s8 }
  0x27   : > { %1096 = dma.hbm_to_vmem [thread:$0]  (!%p1646_p12), %s320_s8, 128, %s322_s12, %s1656_s16  }
  0x28   : > { %s1493_s8 = smov [#allocation8]   ;;  %p1087_p3 = pnand %p1086_p5, %p66_p13 }
  0x29   : > { %s269_s23 = sshll.u32 %s1952_s3, 4  ;;  %s271_s10 = sshll.u32 %s1493_s8, 4  ;;  %s270_s23 = int_to_ptr.hbm [resolvable:$true] %s269_s23  ;;  %s272_s10 = int_to_ptr.vmem [resolvable:$true] %s271_s10 }
  0x2a   : > { %s1494_s3 = smov 128   ;;  %s1495_s9 = smov 8  }
  0x2b   : > { %1089 = dma.hbm_to_vmem [thread:$0]  (!%p1087_p3), %s270_s23, 512, %s272_s10, [#allocation9], %s1494_s3, %s1494_s3, %s1495_s9  }
  0x2c   : > { %s292_s28 = scalar_lea.vmem [#allocation2], %s1642_s18  ;;  %s1954_s29 = sand.u32 1, %s1479_s26  }
  0x2d   : > { %s301_s15 = sshll.u32 %s292_s28, 4  ;;  %s289_s14 = scalar_lea.sflag [#allocation3], %s1954_s29  ;;  %s302_s15 = int_to_ptr.vmem [resolvable:$true] %s301_s15 }
  0x2e   : > { %1093 = dma.hbm_to_vmem [thread:$0]  (!%p1646_p12), %s300_s1, 128, %s302_s15, %s289_s14  }
  0x2f   : > { %s337_s7 = scalar_lea.hbm %s1922_s2, %s1638_s17  ;;  %s332_s12 = scalar_lea.vmem [#allocation7], %s1642_s18 }
  0x30   : > { %s341_s21 = sshll.u32 %s332_s12, 4  ;;  %s339_s22 = sshll.u32 %s337_s7, 4  ;;  %s342_s21 = int_to_ptr.vmem [resolvable:$true] %s341_s21  ;;  %s340_s22 = int_to_ptr.hbm [resolvable:$true] %s339_s22 }
  0x31   : > { %1099 = dma.hbm_to_vmem [thread:$0]  (!%p1646_p12), %s340_s22, 128, %s342_s21, %s1656_s16  }
  0x32   : > { %350 = sbr.rel (%p1676_p4) target bundleno = 540 (0x21c), region = 40  ;;  %s1704_s3 = sand.u32 (!%p1676_p4), 1, %s1475_s25  }
  0x33   : > { %s1707_s1 = sshll.u32 (!%p1676_p4), %s1704_s3, 3  ;;  %s353_s24 = scalar_lea.sflag (!%p1676_p4), [#allocation3], %s1704_s3 }
  0x34   : > { %s356_s28 = scalar_lea.vmem (!%p1676_p4), [#allocation2], %s1707_s1 }
  0x37   : > { %1450 = dma.done.wait (%p1669_p2), %s353_s24, 128  }
  0x38   : > { %1452 = vsyncadd (%p1669_p2), %s353_s24, 4294967168  ;;  %s362_s7 = sand.u32 1, %s1599_s30   ;;  %s366_s9 = scalar_lea.vmem [#allocation5], %s1707_s1 }
  0x39   : > { %s363_s29 = scalar_lea.sflag [#allocation6], %s362_s7 }
  0x3a   : > { %1454 = dma.done.wait (%p1669_p2), %s363_s29, 256  }
  0x3b   : > { %1456 = vsyncadd (%p1669_p2), %s363_s29, 4294967040  ;;  %s376_s14 = scalar_lea.vmem [#allocation7], %s1707_s1 }
  0x3c   : > { %1458 = dma.done.wait (%p66_p13), [#allocation9], 512  }
  0x3d   : > { %1460 = vsyncadd (%p66_p13), [#allocation9], 4294966784  ;;  %v1496_v0 = vmov 1   ;;  %v1497_v1 = vmov 8   ;;  %v1498_v2 = vmov 4   ;;  %v439_v3 = vld [vmem:[#allocation8 + $0x18] sm:$0xff] }
  0x3e   : > { %1199 = vset.pattern.permute.xlu2 %v1496_v0  ;;  %1198 = vset.pattern.permute.xlu1 %v1497_v1  ;;  %v433_v4 = vld [vmem:[%s366_s9] sm:$0xff]  ;;  %v438_v5 = vld [vmem:[#allocation8 + $0x10] sm:$0xff]  ;;  %vm444_vm0 = vcmask 261120   ;;  %v1499_v9 = vmov 2   ;;  %v1500_v10 = vmov 5   ;;  %v1501_v11 = vmov 9  }
  0x3f   : > { %1197 = vset.pattern.permute.xlu0 %v1498_v2  ;;  %460 = vmatpush.msra.mxu0 %v439_v3  ;;  %v437_v6 = vld [vmem:[#allocation8 + $0x8] sm:$0xff]  ;;  %v436_v7 = vld [vmem:[#allocation8] sm:$0xff]  ;;  %v435_v8 = vld [vmem:[%s356_s28] sm:$0xff]  ;;  %v1502_v12 = vmov 3   ;;  %v1503_v13 = vmov 6   ;;  %v1504_v14 = vmov 0  }
  0x40   : > { %495 = vperm.xlu2 %1199, %v433_v4   ;;  %485 = vperm.xlu1 %1198, %v433_v4   ;;  %v434_v15 = vld [vmem:[%s376_s14] sm:$0xff]  ;;  %v1505_v16 = vmov 7   ;;  %v1506_v17 = vmov 11   ;;  %v1507_v18 = vmov 10   ;;  %s1508_s17 = smov 60   ;;  %s1509_s18 = smov 16  }
  0x41   : > { %475 = vperm.xlu0 %1197, %v433_v4   ;;  %461 = vmatpush.msra.mxu0 %v438_v5  ;;  %v1220_v25 = vld [vmem:[%s1924_s4] ss:$0 sm:$0xff]  ;;  %s1510_s19 = smov 120   ;;  %s1511_s11 = smov 112   ;;  %vm702_vm1 = vcmask 31744   ;;  %vm704_vm2 = vcmask 64512  }
  0x42   : > { %s1512_s23 = smov 8   ;;  %s1513_s20 = smov 24   ;;  %vm706_vm3 = vcmask 97280   ;;  %vm708_vm4 = vcmask 130048   ;;  %vm710_vm5 = vcmask 162816   ;;  %vm712_vm6 = vcmask 195584  }
  0x43   : > { %462 = vmatpush.msra.mxu0 %v437_v6  ;;  %s1514_s10 = smov 96   ;;  %s1515_s8 = smov 80   ;;  %vm714_vm7 = vcmask 228352  }
  0x44   : > { %s1516_s12 = smov 52   ;;  %s1517_s21 = smov 4  }
  0x45   : > { %463 = vmatpush.msra.mxu0 %v436_v7  ;;  %s1518_s22 = smov 12   ;;  %s1519_s24 = smov 20  }
  0x46   : > { %1061 = vmatmul.msk.f32.vlgmr.msra.gmra.mxu0 %vm444_vm0, %v435_v8  ;;  %s1520_s28 = smov 116   ;;  %s1521_s29 = smov 88  }
  0x47   : > { %s1522_s9 = smov 104   ;;  %s1523_s14 = smov 100  }
  0x48   : > { %1203 = vset.pattern.permute.xlu2 %v1499_v9  ;;  %1200 = vset.pattern.permute.xlu1 %v1500_v10  ;;  %s1524_s15 = smov 92   ;;  %s1525_s16 = smov 108  }
  0x49   : > { %1201 = vset.pattern.permute.xlu0 %v1501_v11  ;;  %520 = vperm.xlu2 %1203, %v433_v4  }
  0x4a   : > { %500 = vperm.xlu1 %1200, %v433_v4   ;;  %510 = vperm.xlu0 %1201, %v433_v4  }
  0x51   : > { %1205 = vset.pattern.permute.xlu2 %v1502_v12 }
  0x52   : > { %1204 = vset.pattern.permute.xlu1 %v1503_v13  ;;  %1202 = vset.pattern.permute.xlu0 %v1504_v14 }
  0x53   : > { %545 = vperm.xlu2 %1205, %v433_v4   ;;  %525 = vperm.xlu1 %1204, %v433_v4  }
  0x54   : > { %470 = vperm.xlu0 %1202, %v433_v4  }
  0x5b   : > { %1206 = vset.pattern.permute.xlu2 %v1505_v16  ;;  %1207 = vset.pattern.permute.xlu1 %v1506_v17 }
  0x5c   : > { %576 = vperm.xlu0 %1202, %v434_v15   ;;  %555 = vperm.xlu2 %1206, %v433_v4  }
  0x5d   : > { %565 = vperm.xlu1 %1207, %v433_v4  }
  0x64   : > { %1210 = vset.pattern.permute.xlu0 %v1502_v12  ;;  %1212 = vset.pattern.permute.xlu2 %v1500_v10 }
  0x65   : > { %1208 = vset.pattern.permute.xlu1 %v1496_v0  ;;  %601 = vperm.xlu0 %1210, %v434_v15  }
  0x66   : > { %616 = vperm.xlu2 %1212, %v434_v15   ;;  %581 = vperm.xlu1 %1208, %v434_v15  }
  0x6d   : > { %1211 = vset.pattern.permute.xlu0 %v1507_v18 }
  0x6e   : > { %1214 = vset.pattern.permute.xlu2 %v1503_v13  ;;  %1209 = vset.pattern.permute.xlu1 %v1499_v9 }
  0x6f   : > { %535 = vperm.xlu0 %1211, %v433_v4   ;;  %626 = vperm.xlu2 %1214, %v434_v15  }
  0x70   : > { %591 = vperm.xlu1 %1209, %v434_v15  }
  0x77   : > { %661 = vperm.xlu0 %1211, %v434_v15   ;;  %1216 = vset.pattern.permute.xlu2 %v1506_v17 }
  0x78   : > { %1213 = vset.pattern.permute.xlu1 %v1501_v11  ;;  %671 = vperm.xlu2 %1216, %v434_v15  }
  0x79   : > { %651 = vperm.xlu1 %1213, %v434_v15  }
  0x7f   : > { %1219 = vset.pattern.permute.xlu0 %v1506_v17 }
  0x80   : > { %1218 = vset.pattern.permute.xlu2 %v1497_v1 }
  0x81   : > { %1215 = vset.pattern.permute.xlu1 %v1505_v16  ;;  %646 = vperm.xlu2 %1218, %v434_v15  }
  0x82   : > { %636 = vperm.xlu1 %1215, %v434_v15  }
  0x8a   : > { %1217 = vset.pattern.permute.xlu1 %v1498_v2 }
  0x8b   : > { %611 = vperm.xlu1 %1217, %v434_v15  }
  0x9a   : > { %v1735_v19 = vpop.permute.xlu2 %495 }
  0xa3   : > { %v1737_v20 = vpop.permute.xlu2 %520 }
  0xad   : > { %v546_v22 = vpop.permute.xlu2 %545 }
  0xb2   : > { %v486_v23 = vpop.permute.xlu1 %485 }
  0xb3   : > { %v476_v21 = vpop.permute.xlu0 %475 }
  0xb6   : > { %v556_v26 = vpop.permute.xlu2 %555 }
  0xbc   : > { %v511_v24 = vpop.permute.xlu0 %510  ;;  %v501_v27 = vpop.permute.xlu1 %500 }
  0xc0   : > { %v617_v33 = vpop.permute.xlu2 %616 }
  0xc3   : > { %v465_v28 = vpop.f32.mrf.mxu0 }
  0xc4   : > { %v1742_v29 = vadd.f32 %v1220_v25, %v465_v28 }
  0xc5   : > { %v526_v36 = vpop.permute.xlu1 %525 }
  0xc6   : > { %v1744_v30 = vpop.permute.xlu0 %470  ;;  %730 = vrot.lane.b32.xlu2 %v1742_v29, %s1508_s17  ;;  %v558_v31 = vmul.f32 %v556_v26, %v1742_v29  ;;  %v478_v32 = vmul.f32 %v476_v21, %v1742_v29  ;;  %v488_v34 = vmul.f32 %v486_v23, %v1742_v29  ;;  %v619_v35 = vmul.f32 %v617_v33, %v1742_v29  ;;  %s1526_s17 = smov 64  }
  0xc7   : > { %v513_v38 = vmul.f32 %v511_v24, %v1742_v29  ;;  %v503_v39 = vmul.f32 %v501_v27, %v1742_v29  ;;  %v528_v42 = vmul.f32 %v526_v36, %v1742_v29  ;;  %v548_v49 = vmul.f32 %v546_v22, %v1742_v29 }
  0xc8   : > { %560 = vrot.lane.b32.xlu0 %v558_v31, %s1509_s18  ;;  %480 = vrot.lane.b32.xlu1 %v478_v32, %s1510_s19  ;;  %v498_v4 = vmul.f32 %v1735_v19, %v1742_v29  ;;  %v473_v9 = vmul.f32 %v1744_v30, %v1742_v29  ;;  %v523_v13 = vmul.f32 %v1737_v20, %v1742_v29 }
  0xc9   : > { %v627_v55 = vpop.permute.xlu2 %626 }
  0xca   : > { %v629_v57 = vmul.f32 %v627_v55, %v1742_v29 }
  0xce   : > { %v1752_v37 = vpop.permute.xlu0 %576  ;;  %490 = vrot.lane.b32.xlu2 %v488_v34, %s1511_s11 }
  0xcf   : > { %v566_v40 = vpop.permute.xlu1 %565  ;;  %v579_v23 = vmul.f32 %v1752_v37, %v1742_v29 }
  0xd0   : > { %621 = vrot.lane.b32.xlu0 %v619_v35, %s1511_s11  ;;  %515 = vrot.lane.b32.xlu1 %v513_v38, %s1511_s11  ;;  %v568_v46 = vmul.f32 %v566_v40, %v1742_v29 }
  0xd2   : > { %v672_v59 = vpop.permute.xlu2 %671 }
  0xd3   : > { %v674_v61 = vmul.f32 %v672_v59, %v1742_v29 }
  0xd6   : > { %505 = vrot.lane.b32.xlu2 %v503_v39, %s1510_s19 }
  0xd7   : > { %v602_v41 = vpop.permute.xlu0 %601 }
  0xd8   : > { %v582_v43 = vpop.permute.xlu1 %581  ;;  %v604_v52 = vmul.f32 %v602_v41, %v1742_v29 }
  0xd9   : > { %v584_v51 = vmul.f32 %v582_v43, %v1742_v29 }
  0xdb   : > { %v647_v62 = vpop.permute.xlu2 %646 }
  0xdc   : > { %v649_v32 = vmul.f32 %v647_v62, %v1742_v29 }
  0xde   : > { %530 = vrot.lane.b32.xlu2 %v528_v42, %s1510_s19  ;;  %s1808_s19 = sshll.u32 %s1483_s27, 3 }
  0xe1   : > { %v536_v44 = vpop.permute.xlu0 %535 }
  0xe2   : > { %v538_v45 = vmul.f32 %v536_v44, %v1742_v29  ;;  %v592_v50 = vpop.permute.xlu1 %591 }
  0xe3   : > { %v594_v53 = vmul.f32 %v592_v50, %v1742_v29 }
  0xe4   : > { %540 = vrot.lane.b32.xlu1 %v538_v45, %s1511_s11 }
  0xe6   : > { %570 = vrot.lane.b32.xlu2 %v568_v46, %s1512_s23 }
  0xe9   : > { %v662_v47 = vpop.permute.xlu0 %661 }
  0xea   : > { %v664_v48 = vmul.f32 %v662_v47, %v1742_v29 }
  0xeb   : > { %v652_v54 = vpop.permute.xlu1 %651 }
  0xec   : > { %550 = vrot.lane.b32.xlu1 %v548_v49, %s1513_s20  ;;  %666 = vrot.lane.b32.xlu0 %v664_v48, %s1514_s10  ;;  %v654_v56 = vmul.f32 %v652_v54, %v1742_v29  ;;  %s807_s20 = scalar_lea.hbm %s1925_s5, %s1808_s19 }
  0xed   : > { %s811_s27 = sshll.u32 %s807_s20, 4  ;;  %s812_s27 = int_to_ptr.hbm [resolvable:$true] %s811_s27 }
  0xee   : > { %586 = vrot.lane.b32.xlu2 %v584_v51, %s1511_s11 }
  0xf4   : > { %606 = vrot.lane.b32.xlu1 %v604_v52, %s1515_s8  ;;  %v637_v58 = vpop.permute.xlu1 %636 }
  0xf5   : > { %v639_v60 = vmul.f32 %v637_v58, %v1742_v29 }
  0xf6   : > { %596 = vrot.lane.b32.xlu2 %v594_v53, %s1514_s10 }
  0xfc   : > { %656 = vrot.lane.b32.xlu1 %v654_v56, %s1511_s11 }
  0xfd   : > { %v612_v1 = vpop.permute.xlu1 %611 }
  0xfe   : > { %631 = vrot.lane.b32.xlu2 %v629_v57, %s1514_s10  ;;  %v614_v36 = vmul.f32 %v612_v1, %v1742_v29 }
 0x104   : > { %641 = vrot.lane.b32.xlu1 %v639_v60, %s1515_s8 }
 0x106   : > { %676 = vrot.lane.b32.xlu2 %v674_v61, %s1515_s8 }
 0x10e   : > { %762 = vrot.lane.b32.xlu2 %v1742_v29, %s1516_s12  ;;  %s786_s12 = scalar_lea.sflag [#allocation4], %s1704_s3 }
 0x120   : > { %v1779_v63 = vpop.permute.xlu2 %730 }
 0x128   : > { %v491_v0 = vpop.permute.xlu2 %490 }
 0x130   : > { %v506_v2 = vpop.permute.xlu2 %505 }
 0x131   : > { %v508_v6 = vadd.f32 %v506_v2, %v498_v4 }
 0x138   : > { %v531_v5 = vpop.permute.xlu2 %530 }
 0x139   : > { %v533_v15 = vadd.f32 %v531_v5, %v523_v13 }
 0x13a   : > { %v481_v3 = vpop.permute.xlu1 %480  ;;  %v561_v18 = vpop.permute.xlu0 %560 }
 0x13b   : > { %v483_v10 = vadd.f32 %v481_v3, %v473_v9 }
 0x13d   : > { %v1785_v12 = vadd.f32 %v491_v0, %v483_v10 }
 0x140   : > { %v571_v11 = vpop.permute.xlu2 %570 }
 0x142   : > { %v516_v7 = vpop.permute.xlu1 %515  ;;  %v622_v30 = vpop.permute.xlu0 %621 }
 0x143   : > { %v518_v8 = vadd.f32 %v516_v7, %v508_v6  ;;  %v624_v39 = vadd.f32 %v622_v30, %v614_v36 }
 0x145   : > { %681 = vrot.lane.b32.xlu0 %v518_v8, %s1517_s21  ;;  %s1355_s21 = sshra.s32 %s812_s27, 4  ;;  %s1356_s21 = int_to_ptr.hbm [resolvable:$true] %s1355_s21 }
 0x146   : > { %p1362_p12 = scmp.lt.s32.totalorder %s1356_s21, %s1925_s5 }
 0x148   : > { %v587_v14 = vpop.permute.xlu2 %586 }
 0x149   : > { %v589_v20 = vadd.f32 %v587_v14, %v579_v23 }
 0x14d   : > { %693 = vrot.lane.b32.xlu0 %v1785_v12, %s1518_s22  ;;  %s1357_s22 = scalar_lea.hbm %s1356_s21, 8 }
 0x14e   : > { %p1358_p6 = scmp.ne.s32.totalorder %s1356_s21, %s1357_s22 }
 0x150   : > { %v597_v19 = vpop.permute.xlu2 %596  ;;  %p1359_p7 = pnand %p1358_p6, %p1620_p8 }
 0x151   : > { %v599_v26 = vadd.f32 %v597_v19, %v589_v20 }
 0x152   : > { %p1360_p11 = pneg %p1359_p7 }
 0x156   : > { %v541_v16 = vpop.permute.xlu1 %540 }
 0x157   : > { %v543_v17 = vadd.f32 %v541_v16, %v533_v15 }
 0x158   : > { %v632_v31 = vpop.permute.xlu2 %631 }
 0x159   : > { %699 = vrot.lane.b32.xlu2 %v543_v17, %s1519_s24  ;;  %685 = vrot.lane.b32.xlu1 %v543_v17, %s1512_s23  ;;  %v634_v41 = vadd.f32 %v632_v31, %v624_v39 }
 0x15e   : > { %v551_v21 = vpop.permute.xlu1 %550  ;;  %v667_v35 = vpop.permute.xlu0 %666 }
 0x15f   : > { %v553_v22 = vadd.f32 %v551_v21, %v1742_v29 }
 0x160   : > { %v677_v38 = vpop.permute.xlu2 %676 }
 0x161   : > { %v563_v24 = vadd.f32 %v561_v18, %v553_v22  ;;  %696 = vrot.lane.b32.xlu1 %v518_v8, %s1509_s18  ;;  %s1527_s18 = smov 72  }
 0x163   : > { %v1795_v25 = vadd.f32 %v571_v11, %v563_v24 }
 0x165   : > { %689 = vrot.lane.b32.xlu2 %v1795_v25, %s1520_s28 }
 0x166   : > { %v607_v27 = vpop.permute.xlu1 %606 }
 0x167   : > { %v609_v28 = vadd.f32 %v607_v27, %v599_v26 }
 0x168   : > { %v763_v44 = vpop.permute.xlu2 %762 }
 0x169   : > { %718 = vrot.lane.b32.xlu0 %v609_v28, %s1514_s10 }
 0x16e   : > { %v657_v33 = vpop.permute.xlu1 %656 }
 0x16f   : > { %v659_v34 = vadd.f32 %v657_v33, %v649_v32 }
 0x171   : > { %v669_v37 = vadd.f32 %v667_v35, %v659_v34  ;;  %753 = vrot.lane.b32.xlu0 %v609_v28, %s1521_s29  ;;  %s1361_s29 = scalar_lea.hbm %s1925_s5, 16 }
 0x172   : > { %p1363_p13 = scmp.lt.s32.totalorder %s1361_s29, %s1357_s22 }
 0x173   : > { %v679_v40 = vadd.f32 %v677_v38, %v669_v37 }
 0x174   : > { %p1364_p0 = por %p1363_p13, %p1362_p12 }
 0x175   : > { %726 = vrot.lane.b32.xlu2 %v679_v40, %s1522_s9 }
 0x176   : > { %v642_v42 = vpop.permute.xlu1 %641  ;;  %p1365_p1 = pnand %p1364_p0, %p1360_p11 }
 0x177   : > { %v644_v43 = vadd.f32 %v642_v42, %v634_v41 }
 0x179   : > { %722 = vrot.lane.b32.xlu1 %v644_v43, %s1523_s14  ;;  %759 = vrot.lane.b32.xlu0 %v679_v40, %s1514_s10  ;;  %s418_s10 = scalar_lea.vmem [#allocation10], %s1707_s1 }
 0x17a   : > { %s809_s8 = sshll.u32 %s418_s10, 4  ;;  %s810_s8 = int_to_ptr.vmem [resolvable:$true] %s809_s8 }
 0x17d   : > { %739 = vrot.lane.b32.xlu2 %v679_v40, %s1520_s28 }
 0x181   : > { %756 = vrot.lane.b32.xlu1 %v644_v43, %s1524_s15  ;;  %736 = vrot.lane.b32.xlu0 %v644_v43, %s1511_s11 }
 0x185   : > { %771 = vrot.lane.b32.xlu2 %v679_v40, %s1525_s16 }
 0x189   : > { %733 = vrot.lane.b32.xlu1 %v609_v28, %s1525_s16  ;;  %768 = vrot.lane.b32.xlu0 %v644_v43, %s1522_s9 }
 0x191   : > { %765 = vrot.lane.b32.xlu1 %v609_v28, %s1523_s14  ;;  %774 = vrot.lane.b32.xlu0 %v1742_v29, %s1526_s17 }
 0x199   : > { %742 = vrot.lane.b32.xlu1 %v1742_v29, %s1527_s18 }
 0x1b3   : > { %v700_v45 = vpop.permute.xlu2 %699 }
 0x1b7   : > { %v682_v46 = vpop.permute.xlu0 %681 }
 0x1b8   : > { %v703_v48 = vsel %vm702_vm1, %v1785_v12, %v682_v46 }
 0x1bf   : > { %v690_v50 = vpop.permute.xlu2 %689  ;;  %v694_v51 = vpop.permute.xlu0 %693 }
 0x1cb   : > { %v686_v47 = vpop.permute.xlu1 %685 }
 0x1cc   : > { %v705_v49 = vsel %vm704_vm2, %v703_v48, %v686_v47 }
 0x1cd   : > { %v707_v29 = vsel %vm706_vm3, %v705_v49, %v690_v50 }
 0x1ce   : > { %v709_v53 = vsel %vm708_vm4, %v707_v29, %v694_v51 }
 0x1d3   : > { %v697_v52 = vpop.permute.xlu1 %696 }
 0x1d4   : > { %v711_v54 = vsel %vm710_vm5, %v709_v53, %v697_v52 }
 0x1d5   : > { %v713_v55 = vsel %vm712_vm6, %v711_v54, %v700_v45 }
 0x1d6   : > { %v715_v56 = vsel %vm714_vm7, %v713_v55, %v1795_v25 }
 0x1d7   : > { %716 = vst.msk [vmem:[%s418_s10] sm:$0xff] %vm444_vm0, %v715_v56 }
 0x1d8   : > { %1368 = shalt.err (!%p1365_p1)
}
 0x1d9   : > { %1080 = dma.vmem_to_hbm [thread:$0]  (%p1620_p8), %s810_s8, 128, %s812_s27, %s786_s12   ;;  %v727_v61 = vpop.permute.xlu2 %726 }
 0x1da   : > { %s822_s16 = scalar_lea.hbm %s1926_s6, %s1808_s19  ;;  %s1955_s11 = sld [smem:[#allocation27_spill]] }
 0x1db   : > { %v719_v57 = vpop.permute.xlu0 %718  ;;  %s432_s20 = scalar_lea.vmem [#allocation13], %s1707_s1  ;;  %s425_s10 = scalar_lea.vmem [#allocation11], %s1707_s1 }
 0x1dc   : > { %s824_s8 = sshll.u32 %s425_s10, 4  ;;  %s826_s27 = sshll.u32 %s822_s16, 4  ;;  %s825_s8 = int_to_ptr.vmem [resolvable:$true] %s824_s8  ;;  %s827_s27 = int_to_ptr.hbm [resolvable:$true] %s826_s27 }
 0x1dd   : > { %s1858_s12 = sshll.u32 %s432_s20, 4  ;;  %s791_s1 = scalar_lea.sflag [#allocation12], %s362_s7  ;;  %s840_s12 = int_to_ptr.vmem [resolvable:$true] %s1858_s12 }
 0x1de   : > { %s1389_s29 = scalar_lea.hbm %s1926_s6, 16 }
 0x1e0   : > { %s837_s23 = scalar_lea.hbm %s1955_s11, %s1808_s19  ;;  %s1383_s19 = sshra.s32 %s827_s27, 4  ;;  %s1384_s19 = int_to_ptr.hbm [resolvable:$true] %s1383_s19 }
 0x1e1   : > { %v740_v1 = vpop.permute.xlu2 %739  ;;  %s1860_s21 = sshll.u32 %s837_s23, 4  ;;  %s1385_s22 = scalar_lea.hbm %s1384_s19, 8  ;;  %s842_s21 = int_to_ptr.hbm [resolvable:$true] %s1860_s21 }
 0x1e2   : > { %p1386_p2 = scmp.ne.s32.totalorder %s1384_s19, %s1385_s22  ;;  %p1390_p3 = scmp.lt.s32.totalorder %s1384_s19, %s1926_s6 }
 0x1e3   : > { %v754_v58 = vpop.permute.xlu0 %753  ;;  %p1391_p6 = scmp.lt.s32.totalorder %s1389_s29, %s1385_s22 }
 0x1e4   : > { %p1387_p4 = pnand %p1386_p2, %p1620_p8 }
 0x1e5   : > { %p1392_p7 = por %p1391_p6, %p1390_p3 }
 0x1e6   : > { %p1388_p5 = pneg %p1387_p4 }
 0x1e8   : > { %p1393_p11 = pnand %p1392_p7, %p1388_p5 }
 0x1e9   : > { %v772_v12 = vpop.permute.xlu2 %771 }
 0x1eb   : > { %v723_v59 = vpop.permute.xlu1 %722  ;;  %v760_v60 = vpop.permute.xlu0 %759 }
 0x1ec   : > { %v745_v5 = vsel %vm702_vm1, %v719_v57, %v723_v59 }
 0x1ed   : > { %v746_v7 = vsel %vm704_vm2, %v745_v5, %v727_v61 }
 0x1ee   : > { %v747_v10 = vsel %vm706_vm3, %v746_v7, %v1779_v63 }
 0x1f3   : > { %v757_v62 = vpop.permute.xlu1 %756  ;;  %v737_v0 = vpop.permute.xlu0 %736 }
 0x1f4   : > { %v777_v4 = vsel %vm702_vm1, %v754_v58, %v757_v62 }
 0x1f5   : > { %v778_v6 = vsel %vm704_vm2, %v777_v4, %v760_v60 }
 0x1f6   : > { %v779_v9 = vsel %vm706_vm3, %v778_v6, %v763_v44 }
 0x1fb   : > { %v734_v2 = vpop.permute.xlu1 %733  ;;  %v769_v3 = vpop.permute.xlu0 %768 }
 0x1fc   : > { %v748_v13 = vsel %vm708_vm4, %v747_v10, %v734_v2 }
 0x1fd   : > { %v749_v17 = vsel %vm710_vm5, %v748_v13, %v737_v0 }
 0x1fe   : > { %v750_v19 = vsel %vm712_vm6, %v749_v17, %v740_v1 }
 0x203   : > { %v766_v8 = vpop.permute.xlu1 %765  ;;  %v775_v16 = vpop.permute.xlu0 %774 }
 0x204   : > { %v780_v11 = vsel %vm708_vm4, %v779_v9, %v766_v8 }
 0x205   : > { %v781_v14 = vsel %vm710_vm5, %v780_v11, %v769_v3 }
 0x206   : > { %v782_v15 = vsel %vm712_vm6, %v781_v14, %v772_v12 }
 0x207   : > { %v783_v63 = vsel %vm714_vm7, %v782_v15, %v775_v16 }
 0x208   : > { %784 = vst.msk [vmem:[%s432_s20] sm:$0xff] %vm444_vm0, %v783_v63 }
 0x20b   : > { %v743_v18 = vpop.permute.xlu1 %742 }
 0x20c   : > { %v751_v21 = vsel %vm714_vm7, %v750_v19, %v743_v18 }
 0x20d   : > { %752 = vst.msk [vmem:[%s425_s10] sm:$0xff] %vm444_vm0, %v751_v21 }
 0x20e   : > { %1396 = shalt.err (!%p1393_p11)
}
 0x20f   : > { %1081 = dma.vmem_to_hbm [thread:$0]  (%p1620_p8), %s825_s8, 128, %s827_s27, %s791_s1  }
 0x210   : > { %s1411_s30 = sshra.s32 %s842_s21, 4  ;;  %s1417_s16 = scalar_lea.hbm %s1955_s11, 16  ;;  %s1412_s30 = int_to_ptr.hbm [resolvable:$true] %s1411_s30 }
 0x211   : > { %s1413_s7 = scalar_lea.hbm %s1412_s30, 8  ;;  %p1418_p1 = scmp.lt.s32.totalorder %s1412_s30, %s1955_s11 }
 0x212   : > { %p1414_p12 = scmp.ne.s32.totalorder %s1412_s30, %s1413_s7  ;;  %p1419_p2 = scmp.lt.s32.totalorder %s1417_s16, %s1413_s7 }
 0x214   : > { %p1415_p13 = pnand %p1414_p12, %p1620_p8  ;;  %p1420_p4 = por %p1419_p2, %p1418_p1 }
 0x216   : > { %p1416_p0 = pneg %p1415_p13 }
 0x218   : > { %p1421_p5 = pnand %p1420_p4, %p1416_p0 }
 0x21a   : > { %1424 = shalt.err (!%p1421_p5)
}
 0x21b   : > { %1082 = dma.vmem_to_hbm [thread:$0]  (%p1620_p8), %s840_s12, 128, %s842_s21, %s791_s1  }
 0x21c PF: > { %s1956_s23 = sld [smem:[#allocation19_spill]]  ;;  %p1101_p3 = pnand %p1046_p10, %p1627_p9 }
 0x21d   : > { %s1958_s10 = sld [smem:[#allocation21_spill]] }
 0x21e   : > { %p1102_p6 = pneg %p1101_p3 }
 0x222   : > { %s853_s8 = sand.u32 1, %s1956_s23  }
 0x223   : > { %s854_s27 = scalar_lea.sflag [#allocation4], %s853_s8 }
 0x224   : > { %1462 = dma.done.wait (%p1102_p6), %s854_s27, 128  }
 0x225   : > { %1464 = vsyncadd (%p1102_p6), %s854_s27, 4294967168  ;;  %s1959_s19 = sadd.s32 4294967294, %s1958_s10  }
 0x226   : > { %s863_s13 = sand.u32 1, %s1959_s19  }
 0x227   : > { %s864_s22 = scalar_lea.sflag [#allocation12], %s863_s13 }
 0x228   : > { %1466 = dma.done.wait (%p1102_p6), %s864_s22, 256  }
 0x229   : > { %1468 = vsyncadd (%p1102_p6), %s864_s22, 4294967040  ;;  %s31_s29 = sadd.s32 1, %s1958_s10   ;;  %s1960_s12 = sld [smem:[#allocation24_spill]] }
 0x22a   : > { %p28_p8 = scmp.ge.s32.totalorder %s31_s29, 4   ;;  %s1961_s27 = sld [smem:[#allocation20_spill]] }
 0x22b   : > { %s1962_s28 = sld [smem:[#allocation22_spill]]  ;;  %s1963_s24 = smov %s1475_s25 }
 0x22c   : > { %s1964_s25 = smov %s1479_s26  ;;  %30 = sbr.rel (!%p28_p8) target bundleno = 15 (0xf), region = 145 }
 0x22f   : > { %s1965_s26 = smov %s1960_s12 }
 0x231   :  { %880 = vsyncpa [#allocation3], 1 }
 0x232   :  { %882 = vsyncpa [#allocation3 + $0x1], 1 }
 0x233   :  { %883 = vsyncpa [#allocation6], 1 }
 0x234   :  { %885 = vsyncpa [#allocation6 + $0x1], 1 }
 0x235   :  { %886 = vsyncpa [#allocation9], 1 }
 0x236   :  { %887 = vsyncpa [#allocation4], 1 }
 0x237   :  { %889 = vsyncpa [#allocation4 + $0x1], 1 }
 0x238   :  { %890 = vsyncpa [#allocation12], 1 }
 0x239   :  { %892 = vsyncpa [#allocation12 + $0x1], 1 }

</bundles_post_ra>
